<compile_context>
chip_gen: v5e
topology: v5e:2x2
jax: 0.10.0
libtpu: 0.0.40
codegen_flags: <defaults>
</compile_context>

<pallas_src>
import functools

import jax
import jax.numpy as jnp
import numpy as np
from jax.experimental import pallas as pl
from jax.experimental.pallas import tpu as pltpu


# Row slots inside the (48, 128) per-(image, partition) partial-sum block.
_CE, _VNUM, _WSUM, _TP, _PS, _MS = range(6)
_N_STATS = 6
_STAT_ROWS = _N_STATS * 8  # 48


# ----------------------------------------------------------------------------
# Fused kernel: 1x1-conv head + 2-class CE + smooth-L1 + precision/recall sums.
# One grid step = one (image, pixel-partition, pixel-tile); tiles are (TR, 128).
# ----------------------------------------------------------------------------
def _fused_kernel(x_ref, mw_ref, vtgt_ref, w_ref, b_ref,
                  seg_ref, vert_ref, stats_ref, *, c_seg, sigma):
    t = pl.program_id(2)

    c_in = x_ref.shape[1]
    ver_dim = vtgt_ref.shape[1]
    tr = x_ref.shape[2]

    @pl.when(t == 0)
    def _init():
        stats_ref[...] = jnp.zeros_like(stats_ref)

    # Fold a (TR,128) tile to <=8 sublanes with plain VPU adds; the cross-lane
    # reduction to a scalar is deferred to the wrapper (outside the hot loop).
    if tr % 8 == 0:
        rows = 8

        def fold(v):
            return v.reshape(tr // 8, 8, 128).sum(axis=0) if tr > 8 else v
    else:  # tiny-image fallback (tr < 8 or odd row count)
        rows = 1

        def fold(v):
            return v.sum(axis=0, keepdims=True)

    def acc_stat(slot, v):
        r0 = slot * 8
        stats_ref[0, 0, r0:r0 + rows, :] += fold(v)

    def head(c):  # 1x1 conv channel c: VPU broadcast-MACs with SMEM scalar weights
        acc = x_ref[0, 0] * w_ref[0, c]
        for k in range(1, c_in):
            acc = acc + x_ref[0, k] * w_ref[k, c]
        return acc + b_ref[c]  # (TR, 128) f32

    # ---- segmentation: 2-class closed-form softmax CE + argmax statistics ----
    z0 = head(0)
    z1 = head(1)
    seg_ref[0, 0] = z0.astype(seg_ref.dtype)
    seg_ref[0, 1] = z1.astype(seg_ref.dtype)
    y = mw_ref[0, 0]                                      # mask, already f32
    d = z1 - z0
    ce = jnp.maximum(d, 0.0) - d * y + jnp.log1p(jnp.exp(-jnp.abs(d)))
    pred = (d > 0.0).astype(jnp.float32)                  # ties -> class 0 (== argmax)
    acc_stat(_CE, ce)
    acc_stat(_TP, pred * y)
    acc_stat(_PS, pred)
    acc_stat(_MS, y)

    # ---- smooth-L1 vertex loss (sigma=1, normalize=True, reduce=False) ----
    vw = mw_ref[0, 1]
    acc_stat(_WSUM, vw)
    sigma2 = sigma * sigma
    vnum = None
    for j in range(ver_dim):  # interleave compute / store / loss-accumulate
        zj = head(c_seg + j)
        vert_ref[0, j] = zj.astype(vert_ref.dtype)
        diff = vw * (zj - vtgt_ref[0, j])
        ad = jnp.abs(diff)
        in_loss = jnp.where(ad < (1.0 / sigma2),
                            (0.5 * sigma2) * diff * diff,
                            ad - 0.5 / sigma2)
        vnum = in_loss if vnum is None else vnum + in_loss
    acc_stat(_VNUM, vnum)


# ----------------------------------------------------------------------------
# Tile planner: rows-of-128-pixels per tile from a generation-aware VMEM budget.
# ----------------------------------------------------------------------------
def _plan_tiles(n_rows, n_stream_channels):
    try:
        vmem_cap = pltpu.get_tpu_info().vmem_capacity_bytes  # 64 MiB v7x, 128 MiB v5e/v6e
    except Exception:
        vmem_cap = 64 * 1024 * 1024
    budget = vmem_cap // 8                                # pipelined-buffer budget
    bytes_per_row = n_stream_channels * 128 * 4 * 2       # x2: double-buffered streams
    tr_cap = min(256, max(8, budget // bytes_per_row))    # <= 32768 pixels / tile
    tr_cap -= tr_cap % 8

    npart = 2 if (n_rows % 16 == 0 and n_rows >= 16) else 1  # v7x: 2 TensorCores
    r_part = n_rows // npart
    if r_part % 8 != 0:                                   # tiny/odd images: one full tile
        return 1, n_rows, vmem_cap
    tr = min(tr_cap, r_part)
    tr -= tr % 8
    while r_part % tr:
        tr -= 8
    return npart, tr, vmem_cap


# ----------------------------------------------------------------------------
# NetWrapper.forward equivalent.
# ----------------------------------------------------------------------------
def net_wrapper_forward(image, mask, vertex, vertex_weights, w, b, *,
                        c_seg=2, sigma=1.0):
    N, C_in, H, W = image.shape                           # torch NCHW input
    C_out = w.shape[1]
    ver_dim = C_out - c_seg
    P = H * W
    assert c_seg == 2, "closed-form CE kernel assumes 2 segmentation classes"
    assert P % 128 == 0, "H*W must be a multiple of 128"
    # TODO(synk): pad the pixel axis when H*W is not a multiple of 128.
    R = P // 128

    # Free reshapes only: NCHW stays NCHW, pixels split into lane-dense (R, 128) tiles.
    x = image.reshape(N, C_in, R, 128)
    mw = jnp.concatenate(
        [mask.reshape(N, 1, R, 128).astype(jnp.float32),
         vertex_weights.reshape(N, 1, R, 128).astype(jnp.float32)], axis=1)
    vtgt = vertex.reshape(N, ver_dim, R, 128)
    b_flat = b.reshape(C_out)

    n_stream = C_in + 2 + 2 * ver_dim + c_seg             # f32 channels streamed / pixel
    npart, TR, vmem_cap = _plan_tiles(R, n_stream)
    r_part = R // npart
    tiles_per_part = r_part // TR
    grid = (N, npart, tiles_per_part)

    pix_map = lambda n, p, t, _tpp=tiles_per_part: (n, 0, p * _tpp + t, 0)
    stat_map = lambda n, p, t: (n, p, 0, 0)

    cp_kwargs = dict(
        dimension_semantics=("parallel", "parallel", "arbitrary"),
        vmem_limit_bytes=int(min(vmem_cap // 2, 64 * 1024 * 1024)),
    )
    if TR >= 64:  # big tiles: give the register allocator spill headroom
        cp_kwargs["internal_scratch_in_bytes"] = 4 * 1024 * 1024

    kernel = functools.partial(_fused_kernel, c_seg=c_seg, sigma=sigma)

    seg_p, vert_p, stats = pl.pallas_call(
        kernel,
        grid=grid,
        in_specs=[
            pl.BlockSpec((1, C_in, TR, 128), pix_map),
            pl.BlockSpec((1, 2, TR, 128), pix_map),
            pl.BlockSpec((1, ver_dim, TR, 128), pix_map),
            pl.BlockSpec(memory_space=pltpu.MemorySpace.SMEM),   # w  (C_in, C_out)
            pl.BlockSpec(memory_space=pltpu.MemorySpace.SMEM),   # b  (C_out,)
        ],
        out_specs=(
            pl.BlockSpec((1, c_seg, TR, 128), pix_map),
            pl.BlockSpec((1, ver_dim, TR, 128), pix_map),
            pl.BlockSpec((1, 1, _STAT_ROWS, 128), stat_map),
        ),
        out_shape=(
            jax.ShapeDtypeStruct((N, c_seg, R, 128), jnp.float32),        # seg logits
            jax.ShapeDtypeStruct((N, ver_dim, R, 128), jnp.float32),      # vertex preds
            jax.ShapeDtypeStruct((N, npart, _STAT_ROWS, 128), jnp.float32),  # partial sums
        ),
        compiler_params=pltpu.CompilerParams(**cp_kwargs),
    )(x, mw, vtgt, w, b_flat)

    seg_pred = seg_p.reshape(N, c_seg, H, W)               # free reshape back to NCHW
    vertex_pred = vert_p.reshape(N, ver_dim, H, W)

    # Finish the tiny scalar reductions outside the kernel (combines partitions too).
    s = stats.reshape(N, npart, _N_STATS, 8, 128).sum(axis=(1, 3, 4))     # (N, 6)
    ce_sum = s[:, _CE]
    vnum = s[:, _VNUM]
    wsum = s[:, _WSUM]
    tp = jnp.sum(s[:, _TP])
    ps = jnp.sum(s[:, _PS])
    ms = jnp.sum(s[:, _MS])
    loss_seg = ce_sum / P
    loss_vertex = vnum / (ver_dim * wsum + 1e-3)
    precision = tp / (ps + 1e-6)
    recall = tp / (ms + 1e-6)
    return seg_pred, vertex_pred, loss_seg, loss_vertex, precision, recall


# ----------------------------------------------------------------------------
# Pure-JAX reference (for correctness check only).
# ----------------------------------------------------------------------------
def _reference(image, mask, vertex, vertex_weights, w, b, c_seg=2, sigma=1.0):
    N, C_in, H, W = image.shape
    C_out = w.shape[1]
    ver_dim = C_out - c_seg
    P = H * W
    x = image.reshape(N, C_in, P)
    logits = jnp.einsum('nkp,kc->ncp', x, w) + b.reshape(1, C_out, 1)
    seg = logits[:, :c_seg]
    ver = logits[:, c_seg:]
    y = mask.reshape(N, P)
    lse = jax.nn.logsumexp(seg, axis=1)
    picked = jnp.take_along_axis(seg, y[:, None, :], axis=1)[:, 0]
    loss_seg = (lse - picked).mean(axis=1)
    vw = vertex_weights.reshape(N, 1, P)
    s2 = sigma * sigma
    diff = vw * (ver - vertex.reshape(N, ver_dim, P))
    ad = jnp.abs(diff)
    in_loss = jnp.where(ad < 1.0 / s2, 0.5 * s2 * diff * diff, ad - 0.5 / s2)
    loss_ver = in_loss.reshape(N, -1).sum(1) / (ver_dim * vw.reshape(N, -1).sum(1) + 1e-3)
    pred = jnp.argmax(seg, axis=1)
    tp = jnp.sum((pred * y).astype(jnp.float32))
    ps = jnp.sum(pred.astype(jnp.float32))
    ms = jnp.sum(y.astype(jnp.float32))
    return (seg.reshape(N, c_seg, H, W), ver.reshape(N, ver_dim, H, W),
            loss_seg, loss_ver, tp / (ps + 1e-6), tp / (ms + 1e-6))


if __name__ == "__main__":
    key = jax.random.PRNGKey(0)
    N, C_IN, H, W = 2, 4, 16, 16
    C_SEG, VER_DIM = 2, 4
    k1, k2, k3, k4, k5, k6 = jax.random.split(key, 6)

    image = jax.random.normal(k1, (N, C_IN, H, W), jnp.float32)                # NCHW
    mask = (jax.random.uniform(k2, (N, H, W)) > 0.5).astype(jnp.int32)         # {0,1}
    vertex = jax.random.normal(k3, (N, VER_DIM, H, W), jnp.float32)
    vertex_weights = (jax.random.uniform(k4, (N, 1, H, W)) > 0.3).astype(jnp.float32)

    # deterministic synthetic 1x1-conv head parameters
    w = 0.1 * jax.random.normal(k5, (C_IN, C_SEG + VER_DIM), jnp.float32)
    b = 0.01 * jax.random.normal(k6, (1, C_SEG + VER_DIM), jnp.float32)

    outs = net_wrapper_forward(image, mask, vertex, vertex_weights, w, b, c_seg=C_SEG)
    outs = jax.block_until_ready(outs)
    seg_pred, vertex_pred, loss_seg, loss_vertex, precision, recall = outs
    assert seg_pred.shape == (N, C_SEG, H, W)
    assert vertex_pred.shape == (N, VER_DIM, H, W)
    assert loss_seg.shape == (N,) and loss_vertex.shape == (N,)
    assert precision.shape == () and recall.shape == ()

    refs = _reference(image, mask, vertex, vertex_weights, w, b, c_seg=C_SEG)
    for got, want in zip(outs, refs):
        np.testing.assert_allclose(np.asarray(got), np.asarray(want),
                                   rtol=1e-3, atol=1e-4)
    print("KERNEL_OK")
</pallas_src>

<mosaic_0001>
module attributes {stable_mosaic.version = 11 : i64} {
  func.func @_fused_kernel(%arg0: i32, %arg1: i32, %arg2: i32, %arg3: memref<1x4x2x128xf32, #tpu.memory_space<vmem>>, %arg4: memref<1x2x2x128xf32, #tpu.memory_space<vmem>>, %arg5: memref<1x4x2x128xf32, #tpu.memory_space<vmem>>, %arg6: memref<4x6xf32, #tpu.memory_space<smem>>, %arg7: memref<6xf32, #tpu.memory_space<smem>>, %arg8: memref<1x2x2x128xf32, #tpu.memory_space<vmem>>, %arg9: memref<1x4x2x128xf32, #tpu.memory_space<vmem>>, %arg10: memref<1x1x48x128xf32, #tpu.memory_space<vmem>>) attributes {dimension_semantics = [#tpu.dimension_semantics<parallel>, #tpu.dimension_semantics<parallel>, #tpu.dimension_semantics<arbitrary>], iteration_bounds = array<i64: 2, 1, 1>, scalar_prefetch = 0 : i64, scratch_operands = 0 : i64, tpu.core_type = #tpu.core_type<tc>, window_params = [{transform_indices = @transform_0, window_bounds = array<i64: 1, 4, 2, 128>}, {transform_indices = @transform_1, window_bounds = array<i64: 1, 2, 2, 128>}, {transform_indices = @transform_2, window_bounds = array<i64: 1, 4, 2, 128>}, {transform_indices = @transform_3, window_bounds = array<i64: 4, 6>}, {transform_indices = @transform_4, window_bounds = array<i64: 6>}, {transform_indices = @transform_5, window_bounds = array<i64: 1, 2, 2, 128>}, {transform_indices = @transform_6, window_bounds = array<i64: 1, 4, 2, 128>}, {transform_indices = @transform_7, window_bounds = array<i64: 1, 1, 48, 128>}]} {
    %c0_i32 = arith.constant 0 : i32
    %0 = arith.cmpi eq, %arg2, %c0_i32 : i32
    %1 = arith.extui %0 : i1 to i32
    %c0_i32_0 = arith.constant 0 : i32
    %2 = arith.cmpi ne, %1, %c0_i32_0 : i32
    scf.if %2 {
      %cst_256 = arith.constant 0.000000e+00 : f32
      %300 = vector.broadcast %cst_256 : f32 to vector<1x1x48x128xf32>
      %c0_257 = arith.constant 0 : index
      %c0_258 = arith.constant 0 : index
      %c0_259 = arith.constant 0 : index
      %c0_260 = arith.constant 0 : index
      %301 = vector.load %arg10[%c0_257, %c0_258, %c0_259, %c0_260] : memref<1x1x48x128xf32, #tpu.memory_space<vmem>>, vector<1x1x48x128xf32>
      tpu.vector_store %arg10[%c0_257, %c0_258, %c0_259, %c0_260], %300 {strides = array<i32>} : memref<1x1x48x128xf32, #tpu.memory_space<vmem>>, vector<1x1x48x128xf32>,
    } else {
    }
    %c0 = arith.constant 0 : index
    %c0_1 = arith.constant 0 : index
    %c0_2 = arith.constant 0 : index
    %c0_3 = arith.constant 0 : index
    %3 = vector.load %arg3[%c0, %c0_1, %c0_2, %c0_3] : memref<1x4x2x128xf32, #tpu.memory_space<vmem>>, vector<1x1x2x128xf32>
    %4 = vector.shape_cast %3 : vector<1x1x2x128xf32> to vector<2x128xf32>
    %c0_4 = arith.constant 0 : index
    %c0_5 = arith.constant 0 : index
    %5 = memref.load %arg6[%c0_4, %c0_5] : memref<4x6xf32, #tpu.memory_space<smem>>
    %6 = vector.broadcast %5 : f32 to vector<2x128xf32>
    %7 = arith.mulf %4, %6 : vector<2x128xf32>
    %c0_6 = arith.constant 0 : index
    %c1 = arith.constant 1 : index
    %c0_7 = arith.constant 0 : index
    %c0_8 = arith.constant 0 : index
    %8 = vector.load %arg3[%c0_6, %c1, %c0_7, %c0_8] : memref<1x4x2x128xf32, #tpu.memory_space<vmem>>, vector<1x1x2x128xf32>
    %9 = vector.shape_cast %8 : vector<1x1x2x128xf32> to vector<2x128xf32>
    %c1_9 = arith.constant 1 : index
    %c0_10 = arith.constant 0 : index
    %10 = memref.load %arg6[%c1_9, %c0_10] : memref<4x6xf32, #tpu.memory_space<smem>>
    %11 = vector.broadcast %10 : f32 to vector<2x128xf32>
    %12 = arith.mulf %9, %11 : vector<2x128xf32>
    %13 = arith.addf %7, %12 : vector<2x128xf32>
    %c0_11 = arith.constant 0 : index
    %c2 = arith.constant 2 : index
    %c0_12 = arith.constant 0 : index
    %c0_13 = arith.constant 0 : index
    %14 = vector.load %arg3[%c0_11, %c2, %c0_12, %c0_13] : memref<1x4x2x128xf32, #tpu.memory_space<vmem>>, vector<1x1x2x128xf32>
    %15 = vector.shape_cast %14 : vector<1x1x2x128xf32> to vector<2x128xf32>
    %c2_14 = arith.constant 2 : index
    %c0_15 = arith.constant 0 : index
    %16 = memref.load %arg6[%c2_14, %c0_15] : memref<4x6xf32, #tpu.memory_space<smem>>
    %17 = vector.broadcast %16 : f32 to vector<2x128xf32>
    %18 = arith.mulf %15, %17 : vector<2x128xf32>
    %19 = arith.addf %13, %18 : vector<2x128xf32>
    %c0_16 = arith.constant 0 : index
    %c3 = arith.constant 3 : index
    %c0_17 = arith.constant 0 : index
    %c0_18 = arith.constant 0 : index
    %20 = vector.load %arg3[%c0_16, %c3, %c0_17, %c0_18] : memref<1x4x2x128xf32, #tpu.memory_space<vmem>>, vector<1x1x2x128xf32>
    %21 = vector.shape_cast %20 : vector<1x1x2x128xf32> to vector<2x128xf32>
    %c3_19 = arith.constant 3 : index
    %c0_20 = arith.constant 0 : index
    %22 = memref.load %arg6[%c3_19, %c0_20] : memref<4x6xf32, #tpu.memory_space<smem>>
    %23 = vector.broadcast %22 : f32 to vector<2x128xf32>
    %24 = arith.mulf %21, %23 : vector<2x128xf32>
    %25 = arith.addf %19, %24 : vector<2x128xf32>
    %c0_21 = arith.constant 0 : index
    %26 = memref.load %arg7[%c0_21] : memref<6xf32, #tpu.memory_space<smem>>
    %27 = vector.broadcast %26 : f32 to vector<2x128xf32>
    %28 = arith.addf %25, %27 : vector<2x128xf32>
    %c0_22 = arith.constant 0 : index
    %c0_23 = arith.constant 0 : index
    %c0_24 = arith.constant 0 : index
    %c0_25 = arith.constant 0 : index
    %29 = vector.load %arg3[%c0_22, %c0_23, %c0_24, %c0_25] : memref<1x4x2x128xf32, #tpu.memory_space<vmem>>, vector<1x1x2x128xf32>
    %30 = vector.shape_cast %29 : vector<1x1x2x128xf32> to vector<2x128xf32>
    %c0_26 = arith.constant 0 : index
    %c1_27 = arith.constant 1 : index
    %31 = memref.load %arg6[%c0_26, %c1_27] : memref<4x6xf32, #tpu.memory_space<smem>>
    %32 = vector.broadcast %31 : f32 to vector<2x128xf32>
    %33 = arith.mulf %30, %32 : vector<2x128xf32>
    %c0_28 = arith.constant 0 : index
    %c1_29 = arith.constant 1 : index
    %c0_30 = arith.constant 0 : index
    %c0_31 = arith.constant 0 : index
    %34 = vector.load %arg3[%c0_28, %c1_29, %c0_30, %c0_31] : memref<1x4x2x128xf32, #tpu.memory_space<vmem>>, vector<1x1x2x128xf32>
    %35 = vector.shape_cast %34 : vector<1x1x2x128xf32> to vector<2x128xf32>
    %c1_32 = arith.constant 1 : index
    %c1_33 = arith.constant 1 : index
    %36 = memref.load %arg6[%c1_32, %c1_33] : memref<4x6xf32, #tpu.memory_space<smem>>
    %37 = vector.broadcast %36 : f32 to vector<2x128xf32>
    %38 = arith.mulf %35, %37 : vector<2x128xf32>
    %39 = arith.addf %33, %38 : vector<2x128xf32>
    %c0_34 = arith.constant 0 : index
    %c2_35 = arith.constant 2 : index
    %c0_36 = arith.constant 0 : index
    %c0_37 = arith.constant 0 : index
    %40 = vector.load %arg3[%c0_34, %c2_35, %c0_36, %c0_37] : memref<1x4x2x128xf32, #tpu.memory_space<vmem>>, vector<1x1x2x128xf32>
    %41 = vector.shape_cast %40 : vector<1x1x2x128xf32> to vector<2x128xf32>
    %c2_38 = arith.constant 2 : index
    %c1_39 = arith.constant 1 : index
    %42 = memref.load %arg6[%c2_38, %c1_39] : memref<4x6xf32, #tpu.memory_space<smem>>
    %43 = vector.broadcast %42 : f32 to vector<2x128xf32>
    %44 = arith.mulf %41, %43 : vector<2x128xf32>
    %45 = arith.addf %39, %44 : vector<2x128xf32>
    %c0_40 = arith.constant 0 : index
    %c3_41 = arith.constant 3 : index
    %c0_42 = arith.constant 0 : index
    %c0_43 = arith.constant 0 : index
    %46 = vector.load %arg3[%c0_40, %c3_41, %c0_42, %c0_43] : memref<1x4x2x128xf32, #tpu.memory_space<vmem>>, vector<1x1x2x128xf32>
    %47 = vector.shape_cast %46 : vector<1x1x2x128xf32> to vector<2x128xf32>
    %c3_44 = arith.constant 3 : index
    %c1_45 = arith.constant 1 : index
    %48 = memref.load %arg6[%c3_44, %c1_45] : memref<4x6xf32, #tpu.memory_space<smem>>
    %49 = vector.broadcast %48 : f32 to vector<2x128xf32>
    %50 = arith.mulf %47, %49 : vector<2x128xf32>
    %51 = arith.addf %45, %50 : vector<2x128xf32>
    %c1_46 = arith.constant 1 : index
    %52 = memref.load %arg7[%c1_46] : memref<6xf32, #tpu.memory_space<smem>>
    %53 = vector.broadcast %52 : f32 to vector<2x128xf32>
    %54 = arith.addf %51, %53 : vector<2x128xf32>
    %c0_47 = arith.constant 0 : index
    %c0_48 = arith.constant 0 : index
    %c0_49 = arith.constant 0 : index
    %c0_50 = arith.constant 0 : index
    %55 = vector.load %arg8[%c0_47, %c0_48, %c0_49, %c0_50] : memref<1x2x2x128xf32, #tpu.memory_space<vmem>>, vector<1x1x2x128xf32>
    %56 = vector.shape_cast %55 : vector<1x1x2x128xf32> to vector<2x128xf32>
    %57 = vector.shape_cast %28 : vector<2x128xf32> to vector<1x1x2x128xf32>
    tpu.vector_store %arg8[%c0_47, %c0_48, %c0_49, %c0_50], %57 {strides = array<i32>} : memref<1x2x2x128xf32, #tpu.memory_space<vmem>>, vector<1x1x2x128xf32>,
    %c0_51 = arith.constant 0 : index
    %c1_52 = arith.constant 1 : index
    %c0_53 = arith.constant 0 : index
    %c0_54 = arith.constant 0 : index
    %58 = vector.load %arg8[%c0_51, %c1_52, %c0_53, %c0_54] : memref<1x2x2x128xf32, #tpu.memory_space<vmem>>, vector<1x1x2x128xf32>
    %59 = vector.shape_cast %58 : vector<1x1x2x128xf32> to vector<2x128xf32>
    %60 = vector.shape_cast %54 : vector<2x128xf32> to vector<1x1x2x128xf32>
    tpu.vector_store %arg8[%c0_51, %c1_52, %c0_53, %c0_54], %60 {strides = array<i32>} : memref<1x2x2x128xf32, #tpu.memory_space<vmem>>, vector<1x1x2x128xf32>,
    %c0_55 = arith.constant 0 : index
    %c0_56 = arith.constant 0 : index
    %c0_57 = arith.constant 0 : index
    %c0_58 = arith.constant 0 : index
    %61 = vector.load %arg4[%c0_55, %c0_56, %c0_57, %c0_58] : memref<1x2x2x128xf32, #tpu.memory_space<vmem>>, vector<1x1x2x128xf32>
    %62 = vector.shape_cast %61 : vector<1x1x2x128xf32> to vector<2x128xf32>
    %63 = arith.subf %54, %28 : vector<2x128xf32>
    %cst = arith.constant 0.000000e+00 : f32
    %64 = vector.broadcast %cst : f32 to vector<2x128xf32>
    %65 = arith.maximumf %63, %64 : vector<2x128xf32>
    %66 = arith.mulf %63, %62 : vector<2x128xf32>
    %67 = arith.subf %65, %66 : vector<2x128xf32>
    %68 = math.absf %63 : vector<2x128xf32>
    %cst_59 = arith.constant 0.000000e+00 : f32
    %69 = vector.broadcast %cst_59 : f32 to vector<2x128xf32>
    %70 = arith.subf %69, %68 : vector<2x128xf32>
    %71 = math.exp %70 : vector<2x128xf32>
    %72 = math.log1p %71 : vector<2x128xf32>
    %73 = arith.addf %67, %72 : vector<2x128xf32>
    %cst_60 = arith.constant 0.000000e+00 : f32
    %74 = vector.broadcast %cst_60 : f32 to vector<2x128xf32>
    %75 = arith.cmpf ogt, %63, %74 : vector<2x128xf32>
    %76 = arith.extui %75 : vector<2x128xi1> to vector<2x128xi32>
    %77 = arith.sitofp %76 : vector<2x128xi32> to vector<2x128xf32>
    %c0_61 = arith.constant 0 : index
    %c0_62 = arith.constant 0 : index
    %c0_63 = arith.constant 0 : index
    %c0_64 = arith.constant 0 : index
    %78 = vector.load %arg10[%c0_61, %c0_62, %c0_63, %c0_64] : memref<1x1x48x128xf32, #tpu.memory_space<vmem>>, vector<1x1x1x128xf32>
    %79 = vector.shape_cast %78 : vector<1x1x1x128xf32> to vector<1x128xf32>
    %cst_65 = arith.constant dense<0.000000e+00> : vector<128xf32>
    %80 = vector.multi_reduction <add>, %73, %cst_65 [0] : vector<2x128xf32> to vector<128xf32>
    %81 = vector.shape_cast %80 : vector<128xf32> to vector<1x128xf32>
    %82 = arith.addf %79, %81 : vector<1x128xf32>
    %c0_66 = arith.constant 0 : index
    %c0_67 = arith.constant 0 : index
    %c0_68 = arith.constant 0 : index
    %c0_69 = arith.constant 0 : index
    %83 = vector.load %arg10[%c0_66, %c0_67, %c0_68, %c0_69] : memref<1x1x48x128xf32, #tpu.memory_space<vmem>>, vector<1x1x1x128xf32>
    %84 = vector.shape_cast %83 : vector<1x1x1x128xf32> to vector<1x128xf32>
    %85 = vector.shape_cast %82 : vector<1x128xf32> to vector<1x1x1x128xf32>
    tpu.vector_store %arg10[%c0_66, %c0_67, %c0_68, %c0_69], %85 {strides = array<i32>} : memref<1x1x48x128xf32, #tpu.memory_space<vmem>>, vector<1x1x1x128xf32>,
    %86 = arith.mulf %77, %62 : vector<2x128xf32>
    %c0_70 = arith.constant 0 : index
    %c0_71 = arith.constant 0 : index
    %c24 = arith.constant 24 : index
    %c0_72 = arith.constant 0 : index
    %87 = vector.load %arg10[%c0_70, %c0_71, %c24, %c0_72] : memref<1x1x48x128xf32, #tpu.memory_space<vmem>>, vector<1x1x1x128xf32>
    %88 = vector.shape_cast %87 : vector<1x1x1x128xf32> to vector<1x128xf32>
    %cst_73 = arith.constant dense<0.000000e+00> : vector<128xf32>
    %89 = vector.multi_reduction <add>, %86, %cst_73 [0] : vector<2x128xf32> to vector<128xf32>
    %90 = vector.shape_cast %89 : vector<128xf32> to vector<1x128xf32>
    %91 = arith.addf %88, %90 : vector<1x128xf32>
    %c0_74 = arith.constant 0 : index
    %c0_75 = arith.constant 0 : index
    %c24_76 = arith.constant 24 : index
    %c0_77 = arith.constant 0 : index
    %92 = vector.load %arg10[%c0_74, %c0_75, %c24_76, %c0_77] : memref<1x1x48x128xf32, #tpu.memory_space<vmem>>, vector<1x1x1x128xf32>
    %93 = vector.shape_cast %92 : vector<1x1x1x128xf32> to vector<1x128xf32>
    %94 = vector.shape_cast %91 : vector<1x128xf32> to vector<1x1x1x128xf32>
    tpu.vector_store %arg10[%c0_74, %c0_75, %c24_76, %c0_77], %94 {strides = array<i32>} : memref<1x1x48x128xf32, #tpu.memory_space<vmem>>, vector<1x1x1x128xf32>,
    %c0_78 = arith.constant 0 : index
    %c0_79 = arith.constant 0 : index
    %c32 = arith.constant 32 : index
    %c0_80 = arith.constant 0 : index
    %95 = vector.load %arg10[%c0_78, %c0_79, %c32, %c0_80] : memref<1x1x48x128xf32, #tpu.memory_space<vmem>>, vector<1x1x1x128xf32>
    %96 = vector.shape_cast %95 : vector<1x1x1x128xf32> to vector<1x128xf32>
    %cst_81 = arith.constant dense<0.000000e+00> : vector<128xf32>
    %97 = vector.multi_reduction <add>, %77, %cst_81 [0] : vector<2x128xf32> to vector<128xf32>
    %98 = vector.shape_cast %97 : vector<128xf32> to vector<1x128xf32>
    %99 = arith.addf %96, %98 : vector<1x128xf32>
    %c0_82 = arith.constant 0 : index
    %c0_83 = arith.constant 0 : index
    %c32_84 = arith.constant 32 : index
    %c0_85 = arith.constant 0 : index
    %100 = vector.load %arg10[%c0_82, %c0_83, %c32_84, %c0_85] : memref<1x1x48x128xf32, #tpu.memory_space<vmem>>, vector<1x1x1x128xf32>
    %101 = vector.shape_cast %100 : vector<1x1x1x128xf32> to vector<1x128xf32>
    %102 = vector.shape_cast %99 : vector<1x128xf32> to vector<1x1x1x128xf32>
    tpu.vector_store %arg10[%c0_82, %c0_83, %c32_84, %c0_85], %102 {strides = array<i32>} : memref<1x1x48x128xf32, #tpu.memory_space<vmem>>, vector<1x1x1x128xf32>,
    %c0_86 = arith.constant 0 : index
    %c0_87 = arith.constant 0 : index
    %c40 = arith.constant 40 : index
    %c0_88 = arith.constant 0 : index
    %103 = vector.load %arg10[%c0_86, %c0_87, %c40, %c0_88] : memref<1x1x48x128xf32, #tpu.memory_space<vmem>>, vector<1x1x1x128xf32>
    %104 = vector.shape_cast %103 : vector<1x1x1x128xf32> to vector<1x128xf32>
    %cst_89 = arith.constant dense<0.000000e+00> : vector<128xf32>
    %105 = vector.multi_reduction <add>, %62, %cst_89 [0] : vector<2x128xf32> to vector<128xf32>
    %106 = vector.shape_cast %105 : vector<128xf32> to vector<1x128xf32>
    %107 = arith.addf %104, %106 : vector<1x128xf32>
    %c0_90 = arith.constant 0 : index
    %c0_91 = arith.constant 0 : index
    %c40_92 = arith.constant 40 : index
    %c0_93 = arith.constant 0 : index
    %108 = vector.load %arg10[%c0_90, %c0_91, %c40_92, %c0_93] : memref<1x1x48x128xf32, #tpu.memory_space<vmem>>, vector<1x1x1x128xf32>
    %109 = vector.shape_cast %108 : vector<1x1x1x128xf32> to vector<1x128xf32>
    %110 = vector.shape_cast %107 : vector<1x128xf32> to vector<1x1x1x128xf32>
    tpu.vector_store %arg10[%c0_90, %c0_91, %c40_92, %c0_93], %110 {strides = array<i32>} : memref<1x1x48x128xf32, #tpu.memory_space<vmem>>, vector<1x1x1x128xf32>,
    %c0_94 = arith.constant 0 : index
    %c1_95 = arith.constant 1 : index
    %c0_96 = arith.constant 0 : index
    %c0_97 = arith.constant 0 : index
    %111 = vector.load %arg4[%c0_94, %c1_95, %c0_96, %c0_97] : memref<1x2x2x128xf32, #tpu.memory_space<vmem>>, vector<1x1x2x128xf32>
    %112 = vector.shape_cast %111 : vector<1x1x2x128xf32> to vector<2x128xf32>
    %c0_98 = arith.constant 0 : index
    %c0_99 = arith.constant 0 : index
    %c16 = arith.constant 16 : index
    %c0_100 = arith.constant 0 : index
    %113 = vector.load %arg10[%c0_98, %c0_99, %c16, %c0_100] : memref<1x1x48x128xf32, #tpu.memory_space<vmem>>, vector<1x1x1x128xf32>
    %114 = vector.shape_cast %113 : vector<1x1x1x128xf32> to vector<1x128xf32>
    %cst_101 = arith.constant dense<0.000000e+00> : vector<128xf32>
    %115 = vector.multi_reduction <add>, %112, %cst_101 [0] : vector<2x128xf32> to vector<128xf32>
    %116 = vector.shape_cast %115 : vector<128xf32> to vector<1x128xf32>
    %117 = arith.addf %114, %116 : vector<1x128xf32>
    %c0_102 = arith.constant 0 : index
    %c0_103 = arith.constant 0 : index
    %c16_104 = arith.constant 16 : index
    %c0_105 = arith.constant 0 : index
    %118 = vector.load %arg10[%c0_102, %c0_103, %c16_104, %c0_105] : memref<1x1x48x128xf32, #tpu.memory_space<vmem>>, vector<1x1x1x128xf32>
    %119 = vector.shape_cast %118 : vector<1x1x1x128xf32> to vector<1x128xf32>
    %120 = vector.shape_cast %117 : vector<1x128xf32> to vector<1x1x1x128xf32>
    tpu.vector_store %arg10[%c0_102, %c0_103, %c16_104, %c0_105], %120 {strides = array<i32>} : memref<1x1x48x128xf32, #tpu.memory_space<vmem>>, vector<1x1x1x128xf32>,
    %c0_106 = arith.constant 0 : index
    %c0_107 = arith.constant 0 : index
    %c0_108 = arith.constant 0 : index
    %c0_109 = arith.constant 0 : index
    %121 = vector.load %arg3[%c0_106, %c0_107, %c0_108, %c0_109] : memref<1x4x2x128xf32, #tpu.memory_space<vmem>>, vector<1x1x2x128xf32>
    %122 = vector.shape_cast %121 : vector<1x1x2x128xf32> to vector<2x128xf32>
    %c0_110 = arith.constant 0 : index
    %c2_111 = arith.constant 2 : index
    %123 = memref.load %arg6[%c0_110, %c2_111] : memref<4x6xf32, #tpu.memory_space<smem>>
    %124 = vector.broadcast %123 : f32 to vector<2x128xf32>
    %125 = arith.mulf %122, %124 : vector<2x128xf32>
    %c0_112 = arith.constant 0 : index
    %c1_113 = arith.constant 1 : index
    %c0_114 = arith.constant 0 : index
    %c0_115 = arith.constant 0 : index
    %126 = vector.load %arg3[%c0_112, %c1_113, %c0_114, %c0_115] : memref<1x4x2x128xf32, #tpu.memory_space<vmem>>, vector<1x1x2x128xf32>
    %127 = vector.shape_cast %126 : vector<1x1x2x128xf32> to vector<2x128xf32>
    %c1_116 = arith.constant 1 : index
    %c2_117 = arith.constant 2 : index
    %128 = memref.load %arg6[%c1_116, %c2_117] : memref<4x6xf32, #tpu.memory_space<smem>>
    %129 = vector.broadcast %128 : f32 to vector<2x128xf32>
    %130 = arith.mulf %127, %129 : vector<2x128xf32>
    %131 = arith.addf %125, %130 : vector<2x128xf32>
    %c0_118 = arith.constant 0 : index
    %c2_119 = arith.constant 2 : index
    %c0_120 = arith.constant 0 : index
    %c0_121 = arith.constant 0 : index
    %132 = vector.load %arg3[%c0_118, %c2_119, %c0_120, %c0_121] : memref<1x4x2x128xf32, #tpu.memory_space<vmem>>, vector<1x1x2x128xf32>
    %133 = vector.shape_cast %132 : vector<1x1x2x128xf32> to vector<2x128xf32>
    %c2_122 = arith.constant 2 : index
    %c2_123 = arith.constant 2 : index
    %134 = memref.load %arg6[%c2_122, %c2_123] : memref<4x6xf32, #tpu.memory_space<smem>>
    %135 = vector.broadcast %134 : f32 to vector<2x128xf32>
    %136 = arith.mulf %133, %135 : vector<2x128xf32>
    %137 = arith.addf %131, %136 : vector<2x128xf32>
    %c0_124 = arith.constant 0 : index
    %c3_125 = arith.constant 3 : index
    %c0_126 = arith.constant 0 : index
    %c0_127 = arith.constant 0 : index
    %138 = vector.load %arg3[%c0_124, %c3_125, %c0_126, %c0_127] : memref<1x4x2x128xf32, #tpu.memory_space<vmem>>, vector<1x1x2x128xf32>
    %139 = vector.shape_cast %138 : vector<1x1x2x128xf32> to vector<2x128xf32>
    %c3_128 = arith.constant 3 : index
    %c2_129 = arith.constant 2 : index
    %140 = memref.load %arg6[%c3_128, %c2_129] : memref<4x6xf32, #tpu.memory_space<smem>>
    %141 = vector.broadcast %140 : f32 to vector<2x128xf32>
    %142 = arith.mulf %139, %141 : vector<2x128xf32>
    %143 = arith.addf %137, %142 : vector<2x128xf32>
    %c2_130 = arith.constant 2 : index
    %144 = memref.load %arg7[%c2_130] : memref<6xf32, #tpu.memory_space<smem>>
    %145 = vector.broadcast %144 : f32 to vector<2x128xf32>
    %146 = arith.addf %143, %145 : vector<2x128xf32>
    %c0_131 = arith.constant 0 : index
    %c0_132 = arith.constant 0 : index
    %c0_133 = arith.constant 0 : index
    %c0_134 = arith.constant 0 : index
    %147 = vector.load %arg9[%c0_131, %c0_132, %c0_133, %c0_134] : memref<1x4x2x128xf32, #tpu.memory_space<vmem>>, vector<1x1x2x128xf32>
    %148 = vector.shape_cast %147 : vector<1x1x2x128xf32> to vector<2x128xf32>
    %149 = vector.shape_cast %146 : vector<2x128xf32> to vector<1x1x2x128xf32>
    tpu.vector_store %arg9[%c0_131, %c0_132, %c0_133, %c0_134], %149 {strides = array<i32>} : memref<1x4x2x128xf32, #tpu.memory_space<vmem>>, vector<1x1x2x128xf32>,
    %c0_135 = arith.constant 0 : index
    %c0_136 = arith.constant 0 : index
    %c0_137 = arith.constant 0 : index
    %c0_138 = arith.constant 0 : index
    %150 = vector.load %arg5[%c0_135, %c0_136, %c0_137, %c0_138] : memref<1x4x2x128xf32, #tpu.memory_space<vmem>>, vector<1x1x2x128xf32>
    %151 = vector.shape_cast %150 : vector<1x1x2x128xf32> to vector<2x128xf32>
    %152 = arith.subf %146, %151 : vector<2x128xf32>
    %153 = arith.mulf %112, %152 : vector<2x128xf32>
    %154 = math.absf %153 : vector<2x128xf32>
    %cst_139 = arith.constant 1.000000e+00 : f32
    %155 = vector.broadcast %cst_139 : f32 to vector<2x128xf32>
    %156 = arith.cmpf olt, %154, %155 : vector<2x128xf32>
    %cst_140 = arith.constant 5.000000e-01 : f32
    %157 = vector.broadcast %cst_140 : f32 to vector<2x128xf32>
    %158 = arith.mulf %157, %153 : vector<2x128xf32>
    %159 = arith.mulf %158, %153 : vector<2x128xf32>
    %cst_141 = arith.constant 5.000000e-01 : f32
    %160 = vector.broadcast %cst_141 : f32 to vector<2x128xf32>
    %161 = arith.subf %154, %160 : vector<2x128xf32>
    %162 = arith.select %156, %159, %161 : vector<2x128xi1>, vector<2x128xf32>
    %c0_142 = arith.constant 0 : index
    %c0_143 = arith.constant 0 : index
    %c0_144 = arith.constant 0 : index
    %c0_145 = arith.constant 0 : index
    %163 = vector.load %arg3[%c0_142, %c0_143, %c0_144, %c0_145] : memref<1x4x2x128xf32, #tpu.memory_space<vmem>>, vector<1x1x2x128xf32>
    %164 = vector.shape_cast %163 : vector<1x1x2x128xf32> to vector<2x128xf32>
    %c0_146 = arith.constant 0 : index
    %c3_147 = arith.constant 3 : index
    %165 = memref.load %arg6[%c0_146, %c3_147] : memref<4x6xf32, #tpu.memory_space<smem>>
    %166 = vector.broadcast %165 : f32 to vector<2x128xf32>
    %167 = arith.mulf %164, %166 : vector<2x128xf32>
    %c0_148 = arith.constant 0 : index
    %c1_149 = arith.constant 1 : index
    %c0_150 = arith.constant 0 : index
    %c0_151 = arith.constant 0 : index
    %168 = vector.load %arg3[%c0_148, %c1_149, %c0_150, %c0_151] : memref<1x4x2x128xf32, #tpu.memory_space<vmem>>, vector<1x1x2x128xf32>
    %169 = vector.shape_cast %168 : vector<1x1x2x128xf32> to vector<2x128xf32>
    %c1_152 = arith.constant 1 : index
    %c3_153 = arith.constant 3 : index
    %170 = memref.load %arg6[%c1_152, %c3_153] : memref<4x6xf32, #tpu.memory_space<smem>>
    %171 = vector.broadcast %170 : f32 to vector<2x128xf32>
    %172 = arith.mulf %169, %171 : vector<2x128xf32>
    %173 = arith.addf %167, %172 : vector<2x128xf32>
    %c0_154 = arith.constant 0 : index
    %c2_155 = arith.constant 2 : index
    %c0_156 = arith.constant 0 : index
    %c0_157 = arith.constant 0 : index
    %174 = vector.load %arg3[%c0_154, %c2_155, %c0_156, %c0_157] : memref<1x4x2x128xf32, #tpu.memory_space<vmem>>, vector<1x1x2x128xf32>
    %175 = vector.shape_cast %174 : vector<1x1x2x128xf32> to vector<2x128xf32>
    %c2_158 = arith.constant 2 : index
    %c3_159 = arith.constant 3 : index
    %176 = memref.load %arg6[%c2_158, %c3_159] : memref<4x6xf32, #tpu.memory_space<smem>>
    %177 = vector.broadcast %176 : f32 to vector<2x128xf32>
    %178 = arith.mulf %175, %177 : vector<2x128xf32>
    %179 = arith.addf %173, %178 : vector<2x128xf32>
    %c0_160 = arith.constant 0 : index
    %c3_161 = arith.constant 3 : index
    %c0_162 = arith.constant 0 : index
    %c0_163 = arith.constant 0 : index
    %180 = vector.load %arg3[%c0_160, %c3_161, %c0_162, %c0_163] : memref<1x4x2x128xf32, #tpu.memory_space<vmem>>, vector<1x1x2x128xf32>
    %181 = vector.shape_cast %180 : vector<1x1x2x128xf32> to vector<2x128xf32>
    %c3_164 = arith.constant 3 : index
    %c3_165 = arith.constant 3 : index
    %182 = memref.load %arg6[%c3_164, %c3_165] : memref<4x6xf32, #tpu.memory_space<smem>>
    %183 = vector.broadcast %182 : f32 to vector<2x128xf32>
    %184 = arith.mulf %181, %183 : vector<2x128xf32>
    %185 = arith.addf %179, %184 : vector<2x128xf32>
    %c3_166 = arith.constant 3 : index
    %186 = memref.load %arg7[%c3_166] : memref<6xf32, #tpu.memory_space<smem>>
    %187 = vector.broadcast %186 : f32 to vector<2x128xf32>
    %188 = arith.addf %185, %187 : vector<2x128xf32>
    %c0_167 = arith.constant 0 : index
    %c1_168 = arith.constant 1 : index
    %c0_169 = arith.constant 0 : index
    %c0_170 = arith.constant 0 : index
    %189 = vector.load %arg9[%c0_167, %c1_168, %c0_169, %c0_170] : memref<1x4x2x128xf32, #tpu.memory_space<vmem>>, vector<1x1x2x128xf32>
    %190 = vector.shape_cast %189 : vector<1x1x2x128xf32> to vector<2x128xf32>
    %191 = vector.shape_cast %188 : vector<2x128xf32> to vector<1x1x2x128xf32>
    tpu.vector_store %arg9[%c0_167, %c1_168, %c0_169, %c0_170], %191 {strides = array<i32>} : memref<1x4x2x128xf32, #tpu.memory_space<vmem>>, vector<1x1x2x128xf32>,
    %c0_171 = arith.constant 0 : index
    %c1_172 = arith.constant 1 : index
    %c0_173 = arith.constant 0 : index
    %c0_174 = arith.constant 0 : index
    %192 = vector.load %arg5[%c0_171, %c1_172, %c0_173, %c0_174] : memref<1x4x2x128xf32, #tpu.memory_space<vmem>>, vector<1x1x2x128xf32>
    %193 = vector.shape_cast %192 : vector<1x1x2x128xf32> to vector<2x128xf32>
    %194 = arith.subf %188, %193 : vector<2x128xf32>
    %195 = arith.mulf %112, %194 : vector<2x128xf32>
    %196 = math.absf %195 : vector<2x128xf32>
    %cst_175 = arith.constant 1.000000e+00 : f32
    %197 = vector.broadcast %cst_175 : f32 to vector<2x128xf32>
    %198 = arith.cmpf olt, %196, %197 : vector<2x128xf32>
    %cst_176 = arith.constant 5.000000e-01 : f32
    %199 = vector.broadcast %cst_176 : f32 to vector<2x128xf32>
    %200 = arith.mulf %199, %195 : vector<2x128xf32>
    %201 = arith.mulf %200, %195 : vector<2x128xf32>
    %cst_177 = arith.constant 5.000000e-01 : f32
    %202 = vector.broadcast %cst_177 : f32 to vector<2x128xf32>
    %203 = arith.subf %196, %202 : vector<2x128xf32>
    %204 = arith.select %198, %201, %203 : vector<2x128xi1>, vector<2x128xf32>
    %205 = arith.addf %162, %204 : vector<2x128xf32>
    %c0_178 = arith.constant 0 : index
    %c0_179 = arith.constant 0 : index
    %c0_180 = arith.constant 0 : index
    %c0_181 = arith.constant 0 : index
    %206 = vector.load %arg3[%c0_178, %c0_179, %c0_180, %c0_181] : memref<1x4x2x128xf32, #tpu.memory_space<vmem>>, vector<1x1x2x128xf32>
    %207 = vector.shape_cast %206 : vector<1x1x2x128xf32> to vector<2x128xf32>
    %c0_182 = arith.constant 0 : index
    %c4 = arith.constant 4 : index
    %208 = memref.load %arg6[%c0_182, %c4] : memref<4x6xf32, #tpu.memory_space<smem>>
    %209 = vector.broadcast %208 : f32 to vector<2x128xf32>
    %210 = arith.mulf %207, %209 : vector<2x128xf32>
    %c0_183 = arith.constant 0 : index
    %c1_184 = arith.constant 1 : index
    %c0_185 = arith.constant 0 : index
    %c0_186 = arith.constant 0 : index
    %211 = vector.load %arg3[%c0_183, %c1_184, %c0_185, %c0_186] : memref<1x4x2x128xf32, #tpu.memory_space<vmem>>, vector<1x1x2x128xf32>
    %212 = vector.shape_cast %211 : vector<1x1x2x128xf32> to vector<2x128xf32>
    %c1_187 = arith.constant 1 : index
    %c4_188 = arith.constant 4 : index
    %213 = memref.load %arg6[%c1_187, %c4_188] : memref<4x6xf32, #tpu.memory_space<smem>>
    %214 = vector.broadcast %213 : f32 to vector<2x128xf32>
    %215 = arith.mulf %212, %214 : vector<2x128xf32>
    %216 = arith.addf %210, %215 : vector<2x128xf32>
    %c0_189 = arith.constant 0 : index
    %c2_190 = arith.constant 2 : index
    %c0_191 = arith.constant 0 : index
    %c0_192 = arith.constant 0 : index
    %217 = vector.load %arg3[%c0_189, %c2_190, %c0_191, %c0_192] : memref<1x4x2x128xf32, #tpu.memory_space<vmem>>, vector<1x1x2x128xf32>
    %218 = vector.shape_cast %217 : vector<1x1x2x128xf32> to vector<2x128xf32>
    %c2_193 = arith.constant 2 : index
    %c4_194 = arith.constant 4 : index
    %219 = memref.load %arg6[%c2_193, %c4_194] : memref<4x6xf32, #tpu.memory_space<smem>>
    %220 = vector.broadcast %219 : f32 to vector<2x128xf32>
    %221 = arith.mulf %218, %220 : vector<2x128xf32>
    %222 = arith.addf %216, %221 : vector<2x128xf32>
    %c0_195 = arith.constant 0 : index
    %c3_196 = arith.constant 3 : index
    %c0_197 = arith.constant 0 : index
    %c0_198 = arith.constant 0 : index
    %223 = vector.load %arg3[%c0_195, %c3_196, %c0_197, %c0_198] : memref<1x4x2x128xf32, #tpu.memory_space<vmem>>, vector<1x1x2x128xf32>
    %224 = vector.shape_cast %223 : vector<1x1x2x128xf32> to vector<2x128xf32>
    %c3_199 = arith.constant 3 : index
    %c4_200 = arith.constant 4 : index
    %225 = memref.load %arg6[%c3_199, %c4_200] : memref<4x6xf32, #tpu.memory_space<smem>>
    %226 = vector.broadcast %225 : f32 to vector<2x128xf32>
    %227 = arith.mulf %224, %226 : vector<2x128xf32>
    %228 = arith.addf %222, %227 : vector<2x128xf32>
    %c4_201 = arith.constant 4 : index
    %229 = memref.load %arg7[%c4_201] : memref<6xf32, #tpu.memory_space<smem>>
    %230 = vector.broadcast %229 : f32 to vector<2x128xf32>
    %231 = arith.addf %228, %230 : vector<2x128xf32>
    %c0_202 = arith.constant 0 : index
    %c2_203 = arith.constant 2 : index
    %c0_204 = arith.constant 0 : index
    %c0_205 = arith.constant 0 : index
    %232 = vector.load %arg9[%c0_202, %c2_203, %c0_204, %c0_205] : memref<1x4x2x128xf32, #tpu.memory_space<vmem>>, vector<1x1x2x128xf32>
    %233 = vector.shape_cast %232 : vector<1x1x2x128xf32> to vector<2x128xf32>
    %234 = vector.shape_cast %231 : vector<2x128xf32> to vector<1x1x2x128xf32>
    tpu.vector_store %arg9[%c0_202, %c2_203, %c0_204, %c0_205], %234 {strides = array<i32>} : memref<1x4x2x128xf32, #tpu.memory_space<vmem>>, vector<1x1x2x128xf32>,
    %c0_206 = arith.constant 0 : index
    %c2_207 = arith.constant 2 : index
    %c0_208 = arith.constant 0 : index
    %c0_209 = arith.constant 0 : index
    %235 = vector.load %arg5[%c0_206, %c2_207, %c0_208, %c0_209] : memref<1x4x2x128xf32, #tpu.memory_space<vmem>>, vector<1x1x2x128xf32>
    %236 = vector.shape_cast %235 : vector<1x1x2x128xf32> to vector<2x128xf32>
    %237 = arith.subf %231, %236 : vector<2x128xf32>
    %238 = arith.mulf %112, %237 : vector<2x128xf32>
    %239 = math.absf %238 : vector<2x128xf32>
    %cst_210 = arith.constant 1.000000e+00 : f32
    %240 = vector.broadcast %cst_210 : f32 to vector<2x128xf32>
    %241 = arith.cmpf olt, %239, %240 : vector<2x128xf32>
    %cst_211 = arith.constant 5.000000e-01 : f32
    %242 = vector.broadcast %cst_211 : f32 to vector<2x128xf32>
    %243 = arith.mulf %242, %238 : vector<2x128xf32>
    %244 = arith.mulf %243, %238 : vector<2x128xf32>
    %cst_212 = arith.constant 5.000000e-01 : f32
    %245 = vector.broadcast %cst_212 : f32 to vector<2x128xf32>
    %246 = arith.subf %239, %245 : vector<2x128xf32>
    %247 = arith.select %241, %244, %246 : vector<2x128xi1>, vector<2x128xf32>
    %248 = arith.addf %205, %247 : vector<2x128xf32>
    %c0_213 = arith.constant 0 : index
    %c0_214 = arith.constant 0 : index
    %c0_215 = arith.constant 0 : index
    %c0_216 = arith.constant 0 : index
    %249 = vector.load %arg3[%c0_213, %c0_214, %c0_215, %c0_216] : memref<1x4x2x128xf32, #tpu.memory_space<vmem>>, vector<1x1x2x128xf32>
    %250 = vector.shape_cast %249 : vector<1x1x2x128xf32> to vector<2x128xf32>
    %c0_217 = arith.constant 0 : index
    %c5 = arith.constant 5 : index
    %251 = memref.load %arg6[%c0_217, %c5] : memref<4x6xf32, #tpu.memory_space<smem>>
    %252 = vector.broadcast %251 : f32 to vector<2x128xf32>
    %253 = arith.mulf %250, %252 : vector<2x128xf32>
    %c0_218 = arith.constant 0 : index
    %c1_219 = arith.constant 1 : index
    %c0_220 = arith.constant 0 : index
    %c0_221 = arith.constant 0 : index
    %254 = vector.load %arg3[%c0_218, %c1_219, %c0_220, %c0_221] : memref<1x4x2x128xf32, #tpu.memory_space<vmem>>, vector<1x1x2x128xf32>
    %255 = vector.shape_cast %254 : vector<1x1x2x128xf32> to vector<2x128xf32>
    %c1_222 = arith.constant 1 : index
    %c5_223 = arith.constant 5 : index
    %256 = memref.load %arg6[%c1_222, %c5_223] : memref<4x6xf32, #tpu.memory_space<smem>>
    %257 = vector.broadcast %256 : f32 to vector<2x128xf32>
    %258 = arith.mulf %255, %257 : vector<2x128xf32>
    %259 = arith.addf %253, %258 : vector<2x128xf32>
    %c0_224 = arith.constant 0 : index
    %c2_225 = arith.constant 2 : index
    %c0_226 = arith.constant 0 : index
    %c0_227 = arith.constant 0 : index
    %260 = vector.load %arg3[%c0_224, %c2_225, %c0_226, %c0_227] : memref<1x4x2x128xf32, #tpu.memory_space<vmem>>, vector<1x1x2x128xf32>
    %261 = vector.shape_cast %260 : vector<1x1x2x128xf32> to vector<2x128xf32>
    %c2_228 = arith.constant 2 : index
    %c5_229 = arith.constant 5 : index
    %262 = memref.load %arg6[%c2_228, %c5_229] : memref<4x6xf32, #tpu.memory_space<smem>>
    %263 = vector.broadcast %262 : f32 to vector<2x128xf32>
    %264 = arith.mulf %261, %263 : vector<2x128xf32>
    %265 = arith.addf %259, %264 : vector<2x128xf32>
    %c0_230 = arith.constant 0 : index
    %c3_231 = arith.constant 3 : index
    %c0_232 = arith.constant 0 : index
    %c0_233 = arith.constant 0 : index
    %266 = vector.load %arg3[%c0_230, %c3_231, %c0_232, %c0_233] : memref<1x4x2x128xf32, #tpu.memory_space<vmem>>, vector<1x1x2x128xf32>
    %267 = vector.shape_cast %266 : vector<1x1x2x128xf32> to vector<2x128xf32>
    %c3_234 = arith.constant 3 : index
    %c5_235 = arith.constant 5 : index
    %268 = memref.load %arg6[%c3_234, %c5_235] : memref<4x6xf32, #tpu.memory_space<smem>>
    %269 = vector.broadcast %268 : f32 to vector<2x128xf32>
    %270 = arith.mulf %267, %269 : vector<2x128xf32>
    %271 = arith.addf %265, %270 : vector<2x128xf32>
    %c5_236 = arith.constant 5 : index
    %272 = memref.load %arg7[%c5_236] : memref<6xf32, #tpu.memory_space<smem>>
    %273 = vector.broadcast %272 : f32 to vector<2x128xf32>
    %274 = arith.addf %271, %273 : vector<2x128xf32>
    %c0_237 = arith.constant 0 : index
    %c3_238 = arith.constant 3 : index
    %c0_239 = arith.constant 0 : index
    %c0_240 = arith.constant 0 : index
    %275 = vector.load %arg9[%c0_237, %c3_238, %c0_239, %c0_240] : memref<1x4x2x128xf32, #tpu.memory_space<vmem>>, vector<1x1x2x128xf32>
    %276 = vector.shape_cast %275 : vector<1x1x2x128xf32> to vector<2x128xf32>
    %277 = vector.shape_cast %274 : vector<2x128xf32> to vector<1x1x2x128xf32>
    tpu.vector_store %arg9[%c0_237, %c3_238, %c0_239, %c0_240], %277 {strides = array<i32>} : memref<1x4x2x128xf32, #tpu.memory_space<vmem>>, vector<1x1x2x128xf32>,
    %c0_241 = arith.constant 0 : index
    %c3_242 = arith.constant 3 : index
    %c0_243 = arith.constant 0 : index
    %c0_244 = arith.constant 0 : index
    %278 = vector.load %arg5[%c0_241, %c3_242, %c0_243, %c0_244] : memref<1x4x2x128xf32, #tpu.memory_space<vmem>>, vector<1x1x2x128xf32>
    %279 = vector.shape_cast %278 : vector<1x1x2x128xf32> to vector<2x128xf32>
    %280 = arith.subf %274, %279 : vector<2x128xf32>
    %281 = arith.mulf %112, %280 : vector<2x128xf32>
    %282 = math.absf %281 : vector<2x128xf32>
    %cst_245 = arith.constant 1.000000e+00 : f32
    %283 = vector.broadcast %cst_245 : f32 to vector<2x128xf32>
    %284 = arith.cmpf olt, %282, %283 : vector<2x128xf32>
    %cst_246 = arith.constant 5.000000e-01 : f32
    %285 = vector.broadcast %cst_246 : f32 to vector<2x128xf32>
    %286 = arith.mulf %285, %281 : vector<2x128xf32>
    %287 = arith.mulf %286, %281 : vector<2x128xf32>
    %cst_247 = arith.constant 5.000000e-01 : f32
    %288 = vector.broadcast %cst_247 : f32 to vector<2x128xf32>
    %289 = arith.subf %282, %288 : vector<2x128xf32>
    %290 = arith.select %284, %287, %289 : vector<2x128xi1>, vector<2x128xf32>
    %291 = arith.addf %248, %290 : vector<2x128xf32>
    %c0_248 = arith.constant 0 : index
    %c0_249 = arith.constant 0 : index
    %c8 = arith.constant 8 : index
    %c0_250 = arith.constant 0 : index
    %292 = vector.load %arg10[%c0_248, %c0_249, %c8, %c0_250] : memref<1x1x48x128xf32, #tpu.memory_space<vmem>>, vector<1x1x1x128xf32>
    %293 = vector.shape_cast %292 : vector<1x1x1x128xf32> to vector<1x128xf32>
    %cst_251 = arith.constant dense<0.000000e+00> : vector<128xf32>
    %294 = vector.multi_reduction <add>, %291, %cst_251 [0] : vector<2x128xf32> to vector<128xf32>
    %295 = vector.shape_cast %294 : vector<128xf32> to vector<1x128xf32>
    %296 = arith.addf %293, %295 : vector<1x128xf32>
    %c0_252 = arith.constant 0 : index
    %c0_253 = arith.constant 0 : index
    %c8_254 = arith.constant 8 : index
    %c0_255 = arith.constant 0 : index
    %297 = vector.load %arg10[%c0_252, %c0_253, %c8_254, %c0_255] : memref<1x1x48x128xf32, #tpu.memory_space<vmem>>, vector<1x1x1x128xf32>
    %298 = vector.shape_cast %297 : vector<1x1x1x128xf32> to vector<1x128xf32>
    %299 = vector.shape_cast %296 : vector<1x128xf32> to vector<1x1x1x128xf32>
    tpu.vector_store %arg10[%c0_252, %c0_253, %c8_254, %c0_255], %299 {strides = array<i32>} : memref<1x1x48x128xf32, #tpu.memory_space<vmem>>, vector<1x1x1x128xf32>,
    return
  }
  func.func @transform_0(%arg0: i32, %arg1: i32, %arg2: i32) -> (i32, i32, i32, i32) {
    %c1_i32 = arith.constant 1 : i32
    %0 = arith.muli %arg1, %c1_i32 : i32
    %1 = arith.addi %0, %arg2 : i32
    %c0_i32 = arith.constant 0 : i32
    %c0_i32_0 = arith.constant 0 : i32
    %c0_i32_1 = arith.constant 0 : i32
    return %arg0, %c0_i32, %1, %c0_i32_0 : i32, i32, i32, i32
  }
  func.func @transform_1(%arg0: i32, %arg1: i32, %arg2: i32) -> (i32, i32, i32, i32) {
    %c1_i32 = arith.constant 1 : i32
    %0 = arith.muli %arg1, %c1_i32 : i32
    %1 = arith.addi %0, %arg2 : i32
    %c0_i32 = arith.constant 0 : i32
    %c0_i32_0 = arith.constant 0 : i32
    %c0_i32_1 = arith.constant 0 : i32
    return %arg0, %c0_i32, %1, %c0_i32_0 : i32, i32, i32, i32
  }
  func.func @transform_2(%arg0: i32, %arg1: i32, %arg2: i32) -> (i32, i32, i32, i32) {
    %c1_i32 = arith.constant 1 : i32
    %0 = arith.muli %arg1, %c1_i32 : i32
    %1 = arith.addi %0, %arg2 : i32
    %c0_i32 = arith.constant 0 : i32
    %c0_i32_0 = arith.constant 0 : i32
    %c0_i32_1 = arith.constant 0 : i32
    return %arg0, %c0_i32, %1, %c0_i32_0 : i32, i32, i32, i32
  }
  func.func @transform_3(%arg0: i32, %arg1: i32, %arg2: i32) -> (i32, i32) {
    %c0_i32 = arith.constant 0 : i32
    %c0_i32_0 = arith.constant 0 : i32
    %c0_i32_1 = arith.constant 0 : i32
    return %c0_i32, %c0_i32_0 : i32, i32
  }
  func.func @transform_4(%arg0: i32, %arg1: i32, %arg2: i32) -> i32 {
    %c0_i32 = arith.constant 0 : i32
    %c0_i32_0 = arith.constant 0 : i32
    return %c0_i32 : i32
  }
  func.func @transform_5(%arg0: i32, %arg1: i32, %arg2: i32) -> (i32, i32, i32, i32) {
    %c1_i32 = arith.constant 1 : i32
    %0 = arith.muli %arg1, %c1_i32 : i32
    %1 = arith.addi %0, %arg2 : i32
    %c0_i32 = arith.constant 0 : i32
    %c0_i32_0 = arith.constant 0 : i32
    %c0_i32_1 = arith.constant 0 : i32
    return %arg0, %c0_i32, %1, %c0_i32_0 : i32, i32, i32, i32
  }
  func.func @transform_6(%arg0: i32, %arg1: i32, %arg2: i32) -> (i32, i32, i32, i32) {
    %c1_i32 = arith.constant 1 : i32
    %0 = arith.muli %arg1, %c1_i32 : i32
    %1 = arith.addi %0, %arg2 : i32
    %c0_i32 = arith.constant 0 : i32
    %c0_i32_0 = arith.constant 0 : i32
    %c0_i32_1 = arith.constant 0 : i32
    return %arg0, %c0_i32, %1, %c0_i32_0 : i32, i32, i32, i32
  }
  func.func @transform_7(%arg0: i32, %arg1: i32, %arg2: i32) -> (i32, i32, i32, i32) {
    %c0_i32 = arith.constant 0 : i32
    %c0_i32_0 = arith.constant 0 : i32
    %c0_i32_1 = arith.constant 0 : i32
    return %arg0, %arg1, %c0_i32, %c0_i32_0 : i32, i32, i32, i32
  }
}

</mosaic_0001>

<bundles_post_ra>
// kernel: tpu_custom_call.1
= control target key start
LH: loop header
LB: loop body
LE: loop exit
PB: predicated region body
PF: predicated region fallthrough
CT: control target
= control target key end

     0   :  { %s2027_s0 = inlined_call_operand.hbm [shape: f32[2,4,2,128], index: 0, kind: input, shape index: {}]   ;;  %s2028_s1 = inlined_call_operand.hbm [shape: f32[2,2,2,128], index: 1, kind: input, shape index: {}]   ;;  %s2029_s2 = inlined_call_operand.hbm [shape: f32[2,4,2,128], index: 2, kind: input, shape index: {}]   ;;  %s2030_s3 = inlined_call_operand.hbm [shape: f32[4,6], index: 3, kind: input, shape index: {}]   ;;  %s2031_s4 = inlined_call_operand.vmem [shape: f32[6], index: 4, kind: input, shape index: {}]   ;;  %s2032_s5 = inlined_call_operand.hbm [shape: f32[2,2,2,128], index: 5, kind: output, shape index: {0}]   ;;  %s2033_s6 = inlined_call_operand.hbm [shape: f32[2,4,2,128], index: 6, kind: output, shape index: {1}]   ;;  %s2034_s7 = inlined_call_operand.hbm [shape: f32[2,1,48,128], index: 7, kind: output, shape index: {2}]  }
   0x1   :  { %2046 = sst [smem:[#allocation28_spill]] %s2027_s0 }
   0x2   :  { %2047 = sst [smem:[#allocation29_spill]] %s2028_s1 }
   0x3   :  { %2048 = sst [smem:[#allocation30_spill]] %s2030_s3 }
   0x4   :  { %2049 = sst [smem:[#allocation31_spill]] %s2031_s4 }
   0x5   :  { %13 = vsyncpa [#allocation3], 0 }
   0x6   :  { %15 = vsyncpa [#allocation3 + $0x1], 0 }
   0x7   :  { %16 = vsyncpa [#allocation8], 0 }
   0x8   :  { %18 = vsyncpa [#allocation8 + $0x1], 0 }
   0x9   :  { %19 = vsyncpa [#allocation5], 0 }
   0xa   :  { %20 = vsyncpa [#allocation6], 0 }
   0xb   :  { %21 = vsyncpa [#allocation4], 0 }
   0xc   :  { %23 = vsyncpa [#allocation4 + $0x1], 0 }
   0xd   :  { %24 = vsyncpa [#allocation14], 0 }
   0xe   :  { %26 = vsyncpa [#allocation14 + $0x1], 0  ;;  %s1588_s24 = smov 0   ;;  %s1590_s25 = smov 0  }
   0xf   :  { %s1592_s26 = smov 0   ;;  %s1594_s27 = smov 0  }
  0x10   :  { %s1596_s28 = smov 0   ;;  %s1598_s29 = smov 0  }
  0x11 LB: > { %2050 = sst [smem:[#allocation22_spill]] %s1525_s26  ;;  %s51_s30 = sadd.s32 1, %s1533_s28  ;;  %s1537_s29 = sphi %s1598_s29, %s32_s29   ;;  %s1533_s28 = sphi %s1596_s28, %s2079_s28   ;;  %s1529_s27 = sphi %s1594_s27, %s2078_s27   ;;  %s1525_s26 = sphi %s1592_s26, %s2077_s26   ;;  %s1521_s25 = sphi %s1590_s25, %s2081_s25   ;;  %s1517_s24 = sphi %s1588_s24, %s2080_s24  }
  0x12   : > { %2051 = sst [smem:[#allocation23_spill]] %s1533_s28  ;;  %s62_s8 = sadd.s32 1, %s1525_s26 }
  0x13   : > { %2052 = sst [smem:[#allocation24_spill]] %s1537_s29  ;;  %p53_p0 = scmp.ge.s32.totalorder %s51_s30, 2 }
  0x14   : > { %p69_p1 = scmp.ne.s32.totalorder %s1525_s26, %s1521_s25  ;;  %p70_p2 = scmp.eq.s32.totalorder %s1537_s29, 0 }
  0x15   : > { %p1059_p3 = scmp.ge.s32.totalorder %s1537_s29, 2  ;;  %s2083_s30 = smov (%p53_p0, %s51_s30), 0 }
  0x16   : > { %2053 = sst [smem:[#allocation25_spill]] %s2083_s30  ;;  %p71_p4 = por %p70_p2, %p69_p1 }
  0x17   : > { %p1198_p5 = scmp.lt.s32.totalorder %s1537_s29, 2  ;;  %s57_s9 = ssub.s32 %s1533_s28, %s2083_s30 }
  0x18   : > { %s1633_s10 = sand.u32 1, %s1525_s26   ;;  %p60_p6 = scmp.eq.s32.totalorder %s57_s9, 0 }
  0x19   : > { %p1635_p7 = pnand %p1198_p5, %p71_p4  ;;  %s333_s13 = sand.u32 1, %s1537_s29  }
  0x1a   : > { %s1640_s12 = scalar_select %p60_p6, %s1525_s26, %s62_s8  }
  0x1b   : > { %s1063_s14 = sshll.u32 %s1633_s10, 2  ;;  %s1143_s15 = sshll.u32 %s1533_s28, 2 }
  0x1c   : > { %2055 = sst [smem:[#allocation26_spill]] %s1640_s12  ;;  %s337_s19 = scalar_lea.vmem [#allocation7], %s1063_s14 }
  0x1d   : > { %s2056_s1 = sld [smem:[#allocation29_spill]]  ;;  %s347_s20 = sshll.u32 %s337_s19, 4  ;;  %s348_s20 = int_to_ptr.vmem [resolvable:$true] %s347_s20 }
  0x1e   : > { %s1648_s22 = scalar_lea.sflag [#allocation8], %s333_s13  ;;  %s2036_s23 = smov 32  }
  0x1f   : > { %s2038_s8 = smov 2   ;;  %s1657_s9 = sadd.s32 4294967295, %s1537_s29  }
  0x20   : > { %s2035_s14 = sadd.s32 4294967294, %s1537_s29   ;;  %p75_p8 = scmp.ne.s32.totalorder %s1521_s25, %s1517_s24 }
  0x21   : > { %p76_p9 = scmp.eq.s32.totalorder %s1657_s9, 0  ;;  %p205_p10 = scmp.eq.s32.totalorder %s1657_s9, 1 }
  0x22   : > { %p211_p11 = scmp.eq.s32.totalorder %s2035_s14, 1  ;;  %p1056_p12 = scmp.ge.s32.totalorder %s1537_s29, 1 }
  0x23   : > { %s344_s18 = scalar_lea.hbm %s2056_s1, %s1143_s15  ;;  %p1669_p13 = por %p76_p9, %p75_p8 }
  0x24   : > { %s345_s21 = sshll.u32 %s344_s18, 4  ;;  %p1676_p0 = por %p205_p10, %p69_p1  ;;  %s346_s21 = int_to_ptr.hbm [resolvable:$true] %s345_s21 }
  0x25   : > { %1182 = dma.hbm_to_vmem [thread:$0]  (!%p1635_p7), %s346_s21, 64, %s348_s20, %s1648_s22, %s2036_s23, %s2036_s23, %s2038_s8  }
  0x26   : > { %p1680_p2 = por %p211_p11, %p75_p8  ;;  %p276_p4 = scmp.lt.s32.totalorder %s1537_s29, 3 }
  0x27   : > { %s2061_s3 = sld [smem:[#allocation30_spill]]  ;;  %s1060_s8 = sshll.u32 %s1633_s10, 3 }
  0x28   : > { %s2059_s16 = scalar_select %p1680_p2, 1, 0 }
  0x29   : > { %p1688_p5 = pnand %p1056_p12, %p276_p4  ;;  %s2063_s4 = sld [smem:[#allocation31_spill]] }
  0x2a   : > { %2060 = sst [smem:[#allocation27_spill]] %s2059_s16  ;;  %s1142_s17 = sshll.u32 %s1533_s28, 3 }
  0x2b   : > { %p1169_p1 = pneg %p1688_p5  ;;  %s2064_s0 = sld [smem:[#allocation28_spill]] }
  0x2c   : > { %s1541_s30 = smov [#allocation10]   ;;  %s1542_s12 = smov [#allocation11]  }
  0x2d   : > { %s288_s19 = sshll.u32 %s2061_s3, 4  ;;  %p1170_p6 = pnand %p1169_p1, %p76_p9  ;;  %s289_s19 = int_to_ptr.hbm [resolvable:$true] %s288_s19 }
  0x2e   : > { %s313_s21 = scalar_lea.vmem [#allocation2], %s1060_s8  ;;  %s310_s26 = scalar_lea.sflag [#allocation3], %s1633_s10 }
  0x2f   : > { %s298_s23 = sshll.u32 %s2063_s4, 4  ;;  %s323_s4 = sshll.u32 %s313_s21, 4  ;;  %s299_s23 = int_to_ptr.vmem [resolvable:$true] %s298_s23  ;;  %s324_s4 = int_to_ptr.vmem [resolvable:$true] %s323_s4 }
  0x30   : > { %1172 = dma.hbm_to_smem (!%p1170_p6), %s289_s19, 64, %s1541_s30, [#allocation5]  }
  0x31   : > { %s320_s3 = scalar_lea.hbm %s2064_s0, %s1142_s17  ;;  %s2065_s29 = smov 2  }
  0x32   : > { %1175 = dma.vmem_to_smem (!%p1170_p6), %s299_s23, 16, %s1542_s12, [#allocation6]  }
  0x33   : > { %s321_s14 = sshll.u32 %s320_s3, 4  ;;  %s2066_s16 = smov 32   ;;  %s322_s14 = int_to_ptr.hbm [resolvable:$true] %s321_s14 }
  0x34   : > { %1179 = dma.hbm_to_vmem [thread:$0]  (!%p1635_p7), %s322_s14, 128, %s324_s4, %s310_s26, %s2066_s16, %s2066_s16, %s2065_s29  }
  0x35   : > { %s368_s18 = scalar_lea.hbm %s2029_s2, %s1142_s17  ;;  %s361_s19 = scalar_lea.vmem [#allocation9], %s1060_s8 }
  0x36   : > { %s369_s30 = sshll.u32 %s368_s18, 4  ;;  %s371_s0 = sshll.u32 %s361_s19, 4  ;;  %s370_s30 = int_to_ptr.hbm [resolvable:$true] %s369_s30  ;;  %s372_s0 = int_to_ptr.vmem [resolvable:$true] %s371_s0 }
  0x37   : > { %1185 = dma.hbm_to_vmem [thread:$0]  (!%p1635_p7), %s370_s30, 128, %s372_s0, %s1648_s22, %s2066_s16, %s2066_s16, %s2065_s29  }
  0x38   : > { %383 = sbr.rel (%p1688_p5) target bundleno = 175 (0xaf), region = 40  ;;  %s1722_s3 = sand.u32 (!%p1688_p5), 1, %s1521_s25  }
  0x39   : > { %s1725_s4 = sshll.u32 (!%p1688_p5), %s1722_s3, 3  ;;  %s386_s26 = scalar_lea.sflag (!%p1688_p5), [#allocation3], %s1722_s3 }
  0x3a   : > { %s1729_s28 = scalar_lea.vmem (!%p1688_p5), [#allocation2], %s1725_s4 }
  0x3d   : > { %1492 = dma.done.wait (%p1669_p13), %s386_s26, 128  }
  0x3e   : > { %1494 = vsyncadd (%p1669_p13), %s386_s26, 4294967168  ;;  %s395_s0 = sand.u32 1, %s1657_s9   ;;  %s1071_s29 = sshll.u32 %s1722_s3, 2 }
  0x3f   : > { %s396_s10 = scalar_lea.sflag [#allocation8], %s395_s0  ;;  %s1741_s11 = scalar_lea.vmem [#allocation7], %s1071_s29 }
  0x40   : > { %1496 = dma.done.wait (%p1669_p13), %s396_s10, 192  }
  0x41   : > { %1498 = vsyncadd (%p1669_p13), %s396_s10, 4294967104  ;;  %s1748_s12 = scalar_lea.vmem [#allocation9], %s1725_s4 }
  0x42   : > { %1500 = dma.done.wait (%p76_p9), [#allocation5], 64  }
  0x43   : > { %1502 = vsyncadd (%p76_p9), [#allocation5], 4294967232 }
  0x44   : > { %1504 = dma.done.wait (%p76_p9), [#allocation6], 16  }
  0x45   : > { %1506 = vsyncadd (%p76_p9), [#allocation6], 4294967280 }
  0x46   : > { %425 = sfence }
  0x47   : > { %s1147_s22 = smul.u32 48, %s1722_s3  ;;  %s1091_s23 = sld [smem:[#allocation10 + $0x2]]  ;;  %v1543_v0 = vmov 0.0   ;;  %v609_v1 = vld [vmem:[%s1729_s28] sm:$0x3] }
  0x48   : > { %s1093_s8 = sld [smem:[#allocation10 + $0x82]]  ;;  %v1092_v2 = vld [vmem:[%s1729_s28 + $0x2] sm:$0x3]  ;;  %v1094_v4 = vld [vmem:[%s1729_s28 + $0x4] sm:$0x3] }
  0x49   : > { %s1759_s13 = scalar_lea.vmem [#allocation15], %s1147_s22  ;;  %s1095_s16 = sld [smem:[#allocation10 + $0x102]]  ;;  %v1096_v7 = vld [vmem:[%s1729_s28 + $0x6] sm:$0x3]  ;;  %v641_v12 = vld [vmem:[%s1729_s28] sm:$0x3] }
  0x4a   : > { %481 = vst [vmem:[%s1759_s13] sm:$0xff] %v1543_v0  ;;  %s1097_s20 = sld [smem:[#allocation10 + $0x182]]  ;;  %v1101_v15 = vld [vmem:[%s1729_s28 + $0x2] sm:$0x3]  ;;  %v1103_v17 = vld [vmem:[%s1729_s28 + $0x4] sm:$0x3] }
  0x4b   : > { %482 = vst [vmem:[%s1759_s13 + $0x8] sm:$0xff] %v1543_v0  ;;  %s1768_s17 = sld [smem:[#allocation11 + $0x2]]  ;;  %v1105_v21 = vld [vmem:[%s1729_s28 + $0x6] sm:$0x3]  ;;  %v676_v28 = vld [vmem:[%s1729_s28] sm:$0x3] }
  0x4c   : > { %483 = vst [vmem:[%s1759_s13 + $0x10] sm:$0xff] %v1543_v0  ;;  %s1100_s14 = sld [smem:[#allocation10 + $0x3]]  ;;  %v632_v29 = vld [vmem:[%s1748_s12] sm:$0x3]  ;;  %v1112_v32 = vld [vmem:[%s1729_s28 + $0x2] sm:$0x3] }
  0x4d   : > { %484 = vst [vmem:[%s1759_s13 + $0x18] sm:$0xff] %v1543_v0  ;;  %v611_v3 = vstv %s1091_s23  ;;  %s1102_s21 = sld [smem:[#allocation10 + $0x83]]  ;;  %v1114_v35 = vld [vmem:[%s1729_s28 + $0x4] sm:$0x3]  ;;  %v1803_v36 = vld [vmem:[%s1741_s11 + $0x2] sm:$0x3] }
  0x4e   : > { %485 = vst [vmem:[%s1759_s13 + $0x20] sm:$0xff] %v1543_v0  ;;  %v612_v5 = vmul.f32 %v611_v3, %v609_v1  ;;  %v615_v6 = vstv %s1093_s8  ;;  %s1104_s1 = sld [smem:[#allocation10 + $0x103]]  ;;  %v1116_v40 = vld [vmem:[%s1729_s28 + $0x6] sm:$0x3]  ;;  %v1109_v49 = vld [vmem:[%s1748_s12 + $0x2] sm:$0x3] }
  0x4f   : > { %486 = vst [vmem:[%s1759_s13 + $0x28] sm:$0xff] %v1543_v0  ;;  %v616_v8 = vmul.f32 %v1092_v2, %v615_v6  ;;  %v620_v9 = vstv %s1095_s16  ;;  %s1106_s18 = sld [smem:[#allocation10 + $0x183]]  ;;  %v711_v52 = vld [vmem:[%s1729_s28] sm:$0x3]  ;;  %v1123_v55 = vld [vmem:[%s1729_s28 + $0x2] sm:$0x3] }
  0x50   : > { %v621_v10 = vmul.f32 %v1094_v4, %v620_v9  ;;  %v625_v11 = vstv %s1097_s20  ;;  %s1780_s30 = sld [smem:[#allocation11 + $0x3]]  ;;  %v1125_v56 = vld [vmem:[%s1729_s28 + $0x4] sm:$0x3]  ;;  %v1120_v62 = vld [vmem:[%s1748_s12 + $0x4] sm:$0x3] }
  0x51   : > { %v617_v13 = vadd.f32 %v616_v8, %v612_v5  ;;  %v626_v14 = vmul.f32 %v1096_v7, %v625_v11  ;;  %s1111_s19 = sld [smem:[#allocation10 + $0x4]]  ;;  %v629_v22 = vstv %s1768_s17  ;;  %s1810_s17 = scalar_lea.vmem [#allocation13], %s1725_s4  ;;  %v1127_v3 = vld [vmem:[%s1729_s28 + $0x6] sm:$0x3]  ;;  %v487_v7 = vld [vmem:[%s1729_s28] sm:$0x3] }
  0x52   : > { %v643_v16 = vstv %s1100_s14  ;;  %s1784_s26 = sld [smem:[#allocation10 + $0x84]] }
  0x53   : > { %v622_v18 = vadd.f32 %v621_v10, %v617_v13  ;;  %v644_v19 = vmul.f32 %v643_v16, %v641_v12  ;;  %v647_v20 = vstv %s1102_s21  ;;  %s1787_s10 = sld [smem:[#allocation10 + $0x104]]  ;;  %v1077_v12 = vld [vmem:[%s1729_s28 + $0x2] sm:$0x3] }
  0x54   : > { %v648_v23 = vmul.f32 %v1101_v15, %v647_v20  ;;  %v652_v24 = vstv %s1104_s1  ;;  %s1790_s22 = sld [smem:[#allocation10 + $0x184]] }
  0x55   : > { %v627_v25 = vadd.f32 %v626_v14, %v622_v18  ;;  %v653_v26 = vmul.f32 %v1103_v17, %v652_v24  ;;  %v657_v27 = vstv %s1106_s18  ;;  %s1793_s23 = sld [smem:[#allocation11 + $0x4]]  ;;  %v1079_v17 = vld [vmem:[%s1729_s28 + $0x4] sm:$0x3] }
  0x56   : > { %v649_v30 = vadd.f32 %v648_v23, %v644_v19  ;;  %v658_v31 = vmul.f32 %v1105_v21, %v657_v27  ;;  %s1797_s8 = sld [smem:[#allocation10 + $0x5]]  ;;  %v661_v42 = vstv %s1780_s30 }
  0x57   : > { %v630_v33 = vadd.f32 %v629_v22, %v627_v25  ;;  %v678_v34 = vstv %s1111_s19  ;;  %s1800_s16 = sld [smem:[#allocation10 + $0x85]] }
  0x58   : > { %v654_v37 = vadd.f32 %v653_v26, %v649_v30  ;;  %v679_v38 = vmul.f32 %v678_v34, %v676_v28  ;;  %v682_v39 = vstv %s1784_s26  ;;  %s1807_s20 = sld [smem:[#allocation10 + $0x105]]  ;;  %v1081_v26 = vld [vmem:[%s1729_s28 + $0x6] sm:$0x3] }
  0x59   : > { %631 = vst [vmem:[%s1810_s17] sm:$0x3] %v630_v33  ;;  %v633_v41 = vsub.f32 %v630_v33, %v632_v29  ;;  %v683_v43 = vmul.f32 %v1112_v32, %v682_v39  ;;  %v687_v44 = vstv %s1787_s10  ;;  %s1815_s14 = sld [smem:[#allocation10 + $0x185]]  ;;  %s1146_s10 = sshll.u32 %s1529_s27, 3  ;;  %v1131_v39 = vld [vmem:[%s1748_s12 + $0x6] sm:$0x3] }
  0x5a   : > { %v659_v45 = vadd.f32 %v658_v31, %v654_v37  ;;  %v688_v46 = vmul.f32 %v1114_v35, %v687_v44  ;;  %v692_v47 = vstv %s1790_s22  ;;  %s1818_s21 = sld [smem:[#allocation11 + $0x5]] }
  0x5b   : > { %v634_v48 = vmul.f32 %v1803_v36, %v633_v41  ;;  %v684_v50 = vadd.f32 %v683_v43, %v679_v38  ;;  %v693_v51 = vmul.f32 %v1116_v40, %v692_v47  ;;  %s1823_s4 = sld [smem:[#allocation10]]  ;;  %v696_v60 = vstv %s1793_s23  ;;  %s800_s23 = sshll.u32 %s1810_s17, 4  ;;  %s1883_s23 = int_to_ptr.vmem [resolvable:$true] %s800_s23 }
  0x5c   : > { %v662_v53 = vadd.f32 %v661_v42, %v659_v45  ;;  %v713_v54 = vstv %s1797_s8  ;;  %s1828_s1 = sld [smem:[#allocation10 + $0x80]] }
  0x5d   : > { %v635_v57 = vand.u32 2147483647, %v634_v48  ;;  %v637_v58 = vmul.f32 0.5, %v634_v48  ;;  %v689_v59 = vadd.f32 %v688_v46, %v684_v50  ;;  %s1831_s18 = sld [smem:[#allocation10 + $0x100]]  ;;  %v714_v63 = vmul.f32 %v713_v54, %v711_v52 }
  0x5e   : > { %1108 = vst [vmem:[%s1810_s17 + $0x2] sm:$0x3] %v662_v53  ;;  %v667_v61 = vsub.f32 %v662_v53, %v1109_v49  ;;  %v717_v1 = vstv %s1800_s16  ;;  %v722_v2 = vstv %s1807_s20  ;;  %s1838_s30 = sld [smem:[#allocation10 + $0x180]] }
  0x5f   : > { %vm1840_vm0 = vcmp.lt.f32.partialorder %v635_v57, 1.0  ;;  %v1844_v5 = vmul.f32 %v637_v58, %v634_v48  ;;  %v694_v6 = vadd.f32 %v693_v51, %v689_v59  ;;  %s1847_s19 = sld [smem:[#allocation11]]  ;;  %v718_v9 = vmul.f32 %v1123_v55, %v717_v1 }
  0x60   : > { %v668_v8 = vmul.f32 %v1803_v36, %v667_v61  ;;  %v723_v10 = vmul.f32 %v1125_v56, %v722_v2  ;;  %v727_v11 = vstv %s1815_s14  ;;  %s1852_s26 = sld [smem:[#allocation10 + $0x1]]  ;;  %v1099_v13 = vadd.f32 -0.5, %v635_v57 }
  0x61   : > { %v697_v14 = vadd.f32 %v696_v60, %v694_v6  ;;  %v728_v15 = vmul.f32 %v1127_v3, %v727_v11  ;;  %v731_v16 = vstv %s1818_s21  ;;  %s1857_s22 = sld [smem:[#allocation10 + $0x81]]  ;;  %v719_v20 = vadd.f32 %v718_v9, %v714_v63  ;;  %s1872_s21 = scalar_lea.hbm %s2033_s6, %s1146_s10 }
  0x62   : > { %v669_v18 = vand.u32 2147483647, %v668_v8  ;;  %v671_v19 = vmul.f32 0.5, %v668_v8  ;;  %v489_v21 = vstv %s1823_s4  ;;  %s1861_s8 = sld [smem:[#allocation10 + $0x101]]  ;;  %v494_v24 = vstv %s1828_s1  ;;  %s802_s28 = sshll.u32 %s1872_s21, 4  ;;  %s1900_s28 = int_to_ptr.hbm [resolvable:$true] %s802_s28 }
  0x63   : > { %1119 = vst [vmem:[%s1810_s17 + $0x4] sm:$0x3] %v697_v14  ;;  %v702_v22 = vsub.f32 %v697_v14, %v1120_v62  ;;  %v490_v23 = vmul.f32 %v489_v21, %v487_v7  ;;  %v500_v25 = vstv %s1831_s18  ;;  %s1867_s16 = sld [smem:[#allocation10 + $0x181]]  ;;  %v724_v30 = vadd.f32 %v723_v10, %v719_v20  ;;  %s1145_s1 = sshll.u32 %s1529_s27, 2 }
  0x64   : > { %vm1874_vm1 = vcmp.lt.f32.partialorder %v669_v18, 1.0  ;;  %v672_v28 = vmul.f32 %v671_v19, %v668_v8  ;;  %v1110_v29 = vadd.f32 -0.5, %v669_v18  ;;  %v495_v32 = vmul.f32 %v1077_v12, %v494_v24  ;;  %s1890_s4 = sld [smem:[#allocation11 + $0x1]] }
  0x65   : > { %v703_v31 = vmul.f32 %v1803_v36, %v702_v22  ;;  %v501_v33 = vmul.f32 %v1079_v17, %v500_v25  ;;  %v506_v34 = vstv %s1838_s30  ;;  %v640_v35 = vsel %vm1840_vm0, %v1844_v5, %v1099_v13  ;;  %s1907_s30 = scalar_lea.hbm %s2032_s5, %s1145_s1 }
  0x66   : > { %v674_v37 = vsel %vm1874_vm1, %v672_v28, %v1110_v29  ;;  %v729_v38 = vadd.f32 %v728_v15, %v724_v30  ;;  %v507_v40 = vmul.f32 %v1081_v26, %v506_v34  ;;  %v496_v43 = vadd.f32 %v495_v32, %v490_v23 }
  0x67   : > { %v704_v41 = vand.u32 2147483647, %v703_v31  ;;  %v706_v42 = vmul.f32 0.5, %v703_v31  ;;  %v510_v44 = vstv %s1847_s19  ;;  %v513_v46 = vstv %s1852_s26  ;;  %s1397_s19 = sshra.s32 %s1900_s28, 4  ;;  %s1398_s19 = int_to_ptr.hbm [resolvable:$true] %s1397_s19 }
  0x68   : > { %v732_v45 = vadd.f32 %v731_v16, %v729_v38  ;;  %v516_v47 = vstv %s1857_s22  ;;  %v520_v48 = vstv %s1861_s8  ;;  %v502_v52 = vadd.f32 %v501_v33, %v496_v43  ;;  %s1399_s26 = scalar_lea.hbm %s1398_s19, 8  ;;  %s1403_s8 = scalar_lea.hbm %s2033_s6, 16 }
  0x69   : > { %vm1896_vm2 = vcmp.lt.f32.partialorder %v704_v41, 1.0  ;;  %v707_v50 = vmul.f32 %v706_v42, %v703_v31  ;;  %v1121_v51 = vadd.f32 -0.5, %v704_v41  ;;  %v514_v54 = vmul.f32 %v513_v46, %v487_v7  ;;  %p1400_p7 = scmp.ne.s32.totalorder %s1398_s19, %s1399_s26  ;;  %p1404_p10 = scmp.lt.s32.totalorder %s1398_s19, %s2033_s6 }
  0x6a   : > { %1130 = vst [vmem:[%s1810_s17 + $0x6] sm:$0x3] %v732_v45  ;;  %v737_v53 = vsub.f32 %v732_v45, %v1131_v39  ;;  %v517_v55 = vmul.f32 %v1077_v12, %v516_v47  ;;  %v521_v56 = vmul.f32 %v1079_v17, %v520_v48  ;;  %v675_v57 = vadd.f32 %v674_v37, %v640_v35  ;;  %s1914_s17 = scalar_lea.sflag [#allocation14], %s395_s0  ;;  %p1405_p11 = scmp.lt.s32.totalorder %s1403_s8, %s1399_s26 }
  0x6b   : > { %v508_v58 = vadd.f32 %v507_v40, %v502_v52  ;;  %v524_v59 = vstv %s1867_s16  ;;  %v709_v60 = vsel %vm1896_vm2, %v707_v50, %v1121_v51  ;;  %p1401_p8 = pnand %p1400_p7, %p1676_p0 }
  0x6c   : > { %v738_v61 = vmul.f32 %v1803_v36, %v737_v53  ;;  %v518_v62 = vadd.f32 %v517_v55, %v514_v54  ;;  %v525_v63 = vmul.f32 %v1081_v26, %v524_v59  ;;  %p1406_p12 = por %p1405_p11, %p1404_p10 }
  0x6d   : > { %p1402_p9 = pneg %p1401_p8 }
  0x6f   : > { %p1407_p13 = pnand %p1406_p12, %p1402_p9 }
  0x71   : > { %1410 = shalt.err (!%p1407_p13)
}
  0x72   : > { %s1544_s9 = smov 32   ;;  %s1545_s0 = smov 2   ;;  %v511_v1 = vadd.f32 %v510_v44, %v508_v58  ;;  %v739_v2 = vand.u32 2147483647, %v738_v61  ;;  %v741_v3 = vmul.f32 0.5, %v738_v61  ;;  %v522_v4 = vadd.f32 %v521_v56, %v518_v62 }
  0x73   : > { %1164 = dma.vmem_to_hbm [thread:$0]  (%p1676_p0), %s1883_s23, 128, %s1900_s28, %s1914_s17, %s1544_s9, %s1544_s9, %s1545_s0   ;;  %v710_v5 = vadd.f32 %v709_v60, %v675_v57  ;;  %vm556_vm3 = vcmask 1041408  }
  0x74   : > { %s457_s14 = scalar_lea.vmem [#allocation12], %s1071_s29  ;;  %v528_v6 = vstv %s1890_s4  ;;  %s783_s1 = sshll.u32 %s1907_s30, 4  ;;  %vm740_vm4 = vcmp.lt.f32.partialorder %v739_v2, 1.0  ;;  %v742_v7 = vmul.f32 %v741_v3, %v738_v61  ;;  %v1132_v8 = vadd.f32 -0.5, %v739_v2  ;;  %v1938_v10 = vld [vmem:[%s1741_s11] sm:$0x3]  ;;  %s784_s1 = int_to_ptr.hbm [resolvable:$true] %s783_s1 }
  0x75   : > { %s781_s21 = sshll.u32 %s457_s14, 4  ;;  %530 = vst [vmem:[%s457_s14] sm:$0x3] %v511_v1  ;;  %v526_v9 = vadd.f32 %v525_v63, %v522_v4  ;;  %v588_v11 = vsel %vm556_vm3, %v1938_v10, 0.0  ;;  %v600_v12 = vsel %vm556_vm3, %v1803_v36, 0.0  ;;  %s757_s29 = scalar_lea.sflag [#allocation4], %s1722_s3  ;;  %s1940_s21 = int_to_ptr.vmem [resolvable:$true] %s781_s21 }
  0x76   : > { %v744_v13 = vsel %vm740_vm4, %v742_v7, %v1132_v8  ;;  %v589_v15 = vrot.slane %v588_v11, 4  ;;  %v601_v16 = vrot.slane %v600_v12, 4  ;;  %s1425_s11 = sshra.s32 %s784_s1, 4  ;;  %s1431_s12 = scalar_lea.hbm %s2032_s5, 8  ;;  %s1426_s11 = int_to_ptr.hbm [resolvable:$true] %s1425_s11 }
  0x77   : > { %v529_v14 = vadd.f32 %v528_v6, %v526_v9  ;;  %v745_v17 = vadd.f32 %v744_v13, %v710_v5  ;;  %s1427_s23 = scalar_lea.hbm %s1426_s11, 4  ;;  %p1432_p6 = scmp.lt.s32.totalorder %s1426_s11, %s2032_s5 }
  0x78   : > { %v590_v19 = vadd.f32 %v589_v15, %v588_v11  ;;  %v602_v20 = vadd.f32 %v601_v16, %v600_v12  ;;  %p1428_p4 = scmp.ne.s32.totalorder %s1426_s11, %s1427_s23  ;;  %p1433_p7 = scmp.lt.s32.totalorder %s1431_s12, %s1427_s23 }
  0x79   : > { %1088 = vst [vmem:[%s457_s14 + $0x2] sm:$0x3] %v529_v14  ;;  %v1946_v18 = vsub.f32 %v529_v14, %v511_v1  ;;  %v747_v21 = vsel %vm556_vm3, %v745_v17, 0.0 }
  0x7a   : > { %p1429_p5 = pnand %p1428_p4, %p1676_p0  ;;  %p1434_p8 = por %p1433_p7, %p1432_p6 }
  0x7c   : > { %p1430_p1 = pneg %p1429_p5 }
  0x7e   : > { %p1435_p9 = pnand %p1434_p8, %p1430_p1 }
  0x80   : > { %1438 = shalt.err (!%p1435_p9)
}
  0x81   : > { %1163 = dma.vmem_to_hbm [thread:$0]  (%p1676_p0), %s1940_s21, 64, %s784_s1, %s757_s29, %s1544_s9, %s1544_s9, %s1545_s0   ;;  %v538_v36 = vand.u32 2147483647, %v1946_v18  ;;  %vm552_vm5 = vcmp.gt.f32.partialorder %v1946_v18, 0.0  ;;  %v591_v23 = vrot.slane %v590_v19, 2  ;;  %v603_v24 = vrot.slane %v602_v20, 2 }
  0x82   : > { %v1089_v22 = vsel %vm552_vm5, 1.0, %v1543_v0  ;;  %v748_v25 = vrot.slane %v747_v21, 4  ;;  %v587_v44 = vld [vmem:[%s1759_s13 + $0x28] sm:$0x1]  ;;  %v599_v45 = vld [vmem:[%s1759_s13 + $0x10] sm:$0x1]  ;;  %v536_v5 = vmul.f32 %v1946_v18, %v1938_v10 }
  0x83   : > { %v539_v26 = vsub.f32 0.0, %v538_v36  ;;  %v566_v27 = vmul.f32 %v1089_v22, %v1938_v10  ;;  %v578_v28 = vsel %vm556_vm3, %v1089_v22, 0.0  ;;  %v592_v30 = vadd.f32 %v591_v23, %v590_v19  ;;  %v746_v54 = vld [vmem:[%s1759_s13 + $0x8] sm:$0x1]  ;;  %v577_v60 = vld [vmem:[%s1759_s13 + $0x20] sm:$0x1] }
  0x84   : > { %v579_v29 = vrot.slane %v578_v28, 4  ;;  %v604_v31 = vadd.f32 %v603_v24, %v602_v20  ;;  %v749_v32 = vadd.f32 %v748_v25, %v747_v21  ;;  %v567_v61 = vld [vmem:[%s1759_s13 + $0x18] sm:$0x1]  ;;  %v535_v4 = vmax.f32 %v1946_v18, 0.0  ;;  %s1148_s3 = smul.u32 48, %s1529_s27  ;;  %s819_s22 = sshll.u32 %s1759_s13, 4  ;;  %s820_s22 = int_to_ptr.vmem [resolvable:$true] %s819_s22 }
  0x85   : > { %v540_v33 = vmul.f32 1.442695, %v539_v26  ;;  %v568_v34 = vsel %vm556_vm3, %v566_v27, 0.0  ;;  %v593_v0 = vrot.slane %v592_v30, 1  ;;  %v555_v20 = vld [vmem:[%s1759_s13] sm:$0x1] }
  0x86   : > { %v569_v35 = vrot.slane %v568_v34, 4  ;;  %v580_v37 = vadd.f32 %v579_v29, %v578_v28  ;;  %v605_v38 = vrot.slane %v604_v31, 1  ;;  %v750_v39 = vrot.slane %v749_v32, 2  ;;  %s818_s10 = scalar_lea.hbm %s2034_s7, %s1148_s3  ;;  %s1459_s0 = scalar_lea.hbm %s2034_s7, 96 }
  0x87   : > { %1259 = vpow2.f32 %v540_v33  ;;  %v594_v42 = vadd.f32 %v593_v0, %v592_v30  ;;  %v537_v11 = vsub.f32 %v535_v4, %v536_v5  ;;  %s821_s8 = sshll.u32 %s818_s10, 4  ;;  %s822_s8 = int_to_ptr.hbm [resolvable:$true] %s821_s8 }
  0x88   : > { %v570_v40 = vadd.f32 %v569_v35, %v568_v34  ;;  %v581_v41 = vrot.slane %v580_v37, 2  ;;  %v606_v43 = vadd.f32 %v605_v38, %v604_v31  ;;  %v751_v46 = vadd.f32 %v750_v39, %v749_v32  ;;  %s1453_s16 = sshra.s32 %s822_s8, 4  ;;  %s1454_s16 = int_to_ptr.hbm [resolvable:$true] %s1453_s16 }
  0x89   : > { %v595_v49 = vadd.f32 %v594_v42, %v587_v44  ;;  %s1455_s27 = scalar_lea.hbm %s1454_s16, 48  ;;  %p1460_p13 = scmp.lt.s32.totalorder %s1454_s16, %s2034_s7 }
  0x8a   : > { %v571_v47 = vrot.slane %v570_v40, 2  ;;  %v582_v48 = vadd.f32 %v581_v41, %v580_v37  ;;  %v607_v50 = vadd.f32 %v606_v43, %v599_v45  ;;  %v752_v51 = vrot.slane %v751_v46, 1  ;;  %p1456_p10 = scmp.ne.s32.totalorder %s1454_s16, %s1455_s27  ;;  %p1461_p4 = scmp.lt.s32.totalorder %s1459_s0, %s1455_s27 }
  0x8b   : > { %596 = vst [vmem:[%s1759_s13 + $0x28] sm:$0x1] %v595_v49 }
  0x8c   : > { %v572_v52 = vadd.f32 %v571_v47, %v570_v40  ;;  %v583_v53 = vrot.slane %v582_v48, 1  ;;  %608 = vst [vmem:[%s1759_s13 + $0x10] sm:$0x1] %v607_v50  ;;  %v753_v56 = vadd.f32 %v752_v51, %v751_v46  ;;  %p1457_p11 = pnand %p1456_p10, %p1676_p0  ;;  %p1462_p5 = por %p1461_p4, %p1460_p13 }
  0x8d   : > { %v1260_v55 = vpop.eup %1259 }
  0x8e   : > { %v542_v57 = vadd.f32 1.0, %v1260_v55  ;;  %v545_v58 = vmul.f32 -0.5, %v1260_v55  ;;  %v573_v59 = vrot.slane %v572_v52, 1  ;;  %v584_v62 = vadd.f32 %v583_v53, %v582_v48  ;;  %p1458_p12 = pneg %p1457_p11 }
  0x8f   : > { %v754_v63 = vadd.f32 %v753_v56, %v746_v54  ;;  %v548_v6 = vand.u32 2147483647, %v1260_v55 }
  0x90   : > { %1261 = vlog2.f32 %v542_v57  ;;  %v574_v1 = vadd.f32 %v573_v59, %v572_v52  ;;  %v546_v2 = vadd.f32 1.0, %v545_v58  ;;  %v585_v3 = vadd.f32 %v584_v62, %v577_v60  ;;  %p1463_p1 = pnand %p1462_p5, %p1458_p12 }
  0x91   : > { %755 = vst [vmem:[%s1759_s13 + $0x8] sm:$0x1] %v754_v63  ;;  %vm549_vm6 = vcmp.lt.f32.partialorder %v548_v6, 0.0004427343 }
  0x92   : > { %v575_v7 = vadd.f32 %v574_v1, %v567_v61  ;;  %586 = vst [vmem:[%s1759_s13 + $0x20] sm:$0x1] %v585_v3  ;;  %v547_v8 = vmul.f32 %v1260_v55, %v546_v2 }
  0x94   : > { %576 = vst [vmem:[%s1759_s13 + $0x18] sm:$0x1] %v575_v7 }
  0x96   : > { %v1262_v9 = vpop.eup %1261 }
  0x97   : > { %v544_v12 = vmul.f32 0.6931472, %v1262_v9 }
  0x99   : > { %v550_v13 = vsel %vm549_vm6, %v547_v8, %v544_v12 }
  0x9a   : > { %v551_v14 = vadd.f32 %v550_v13, %v537_v11 }
  0x9c   : > { %v557_v15 = vsel %vm556_vm3, %v551_v14, 0.0 }
  0x9d   : > { %v558_v16 = vrot.slane %v557_v15, 4 }
  0x9f   : > { %v559_v17 = vadd.f32 %v558_v16, %v557_v15 }
  0xa1   : > { %v560_v10 = vrot.slane %v559_v17, 2 }
  0xa3   : > { %v561_v18 = vadd.f32 %v560_v10, %v559_v17 }
  0xa5   : > { %v562_v19 = vrot.slane %v561_v18, 1 }
  0xa7   : > { %v563_v21 = vadd.f32 %v562_v19, %v561_v18 }
  0xa9   : > { %v564_v36 = vadd.f32 %v563_v21, %v555_v20 }
  0xab   : > { %565 = vst [vmem:[%s1759_s13] sm:$0x1] %v564_v36 }
  0xac   : > { %1466 = shalt.err (!%p1463_p1)
}
  0xad   : > { %s1546_s13 = smov 128   ;;  %s1547_s1 = smov 8  }
  0xae   : > { %1165 = dma.vmem_to_hbm [thread:$0]  (%p1676_p0), %s820_s22, 768, %s822_s8, %s1914_s17, %s1546_s13, %s1546_s13, %s1547_s1  }
  0xaf PF: > { %s2074_s11 = sld [smem:[#allocation24_spill]]  ;;  %s836_s23 = sand.u32 1, %s1517_s24  }
  0xb0   : > { %p1187_p6 = pnand %p1059_p3, %p1680_p2  ;;  %s837_s28 = scalar_lea.sflag [#allocation4], %s836_s23 }
  0xb2   : > { %p1188_p7 = pneg %p1187_p6 }
  0xb4   : > { %1508 = dma.done.wait (%p1188_p7), %s837_s28, 64  }
  0xb5   : > { %1510 = vsyncadd (%p1188_p7), %s837_s28, 4294967232  ;;  %s2075_s4 = sadd.s32 4294967294, %s2074_s11  }
  0xb6   : > { %s846_s12 = sand.u32 1, %s2075_s4  }
  0xb7   : > { %s847_s18 = scalar_lea.sflag [#allocation14], %s846_s12 }
  0xb8   : > { %1512 = dma.done.wait (%p1188_p7), %s847_s18, 896  }
  0xb9   : > { %1514 = vsyncadd (%p1188_p7), %s847_s18, 4294966400  ;;  %s32_s29 = sadd.s32 1, %s2074_s11   ;;  %s2076_s15 = sld [smem:[#allocation22_spill]] }
  0xba   : > { %p29_p0 = scmp.ge.s32.totalorder %s32_s29, 4   ;;  %s2077_s26 = sld [smem:[#allocation26_spill]] }
  0xbb   : > { %s2078_s27 = sld [smem:[#allocation23_spill]]  ;;  %s2080_s24 = smov %s1521_s25 }
  0xbc   : > { %s2079_s28 = sld [smem:[#allocation25_spill]]  ;;  %31 = sbr.rel (!%p29_p0) target bundleno = 17 (0x11), region = 166 }
  0xbf   : > { %s2081_s25 = smov %s2076_s15 }
  0xc1   :  { %863 = vsyncpa [#allocation3], 1 }
  0xc2   :  { %865 = vsyncpa [#allocation3 + $0x1], 1 }
  0xc3   :  { %866 = vsyncpa [#allocation8], 1 }
  0xc4   :  { %868 = vsyncpa [#allocation8 + $0x1], 1 }
  0xc5   :  { %869 = vsyncpa [#allocation4], 1 }
  0xc6   :  { %871 = vsyncpa [#allocation4 + $0x1], 1 }
  0xc7   :  { %872 = vsyncpa [#allocation14], 1 }
  0xc8   :  { %874 = vsyncpa [#allocation14 + $0x1], 1 }
  0xc9   :  { %875 = vsyncpa [#allocation5], 1 }
  0xca   :  { %877 = vsyncpa [#allocation5 + $0x1], 1 }
  0xcb   :  { %878 = vsyncpa [#allocation6], 1 }
  0xcc   :  { %880 = vsyncpa [#allocation6 + $0x1], 1 }

</bundles_post_ra>
